<compile_context>
chip_gen: v7x
topology: tpu7x:2x2x1
jax: 0.10.0
libtpu: 0.0.40
codegen_flags: <defaults>
</compile_context>

<pallas_src>
import jax
import jax.numpy as jnp
from jax.experimental import pallas as pl
from jax.experimental.pallas import tpu as pltpu

# --- model hyper-parameters (LSTMClassifier(output_size, input_size, hidden_size, num_layers))
OUTPUT_SIZE = 4
INPUT_SIZE = 16
HIDDEN_SIZE = 32
NUM_LAYERS = 2
FC1_SIZE = 128

BATCH = 8
SEQ = 8


def lstm_classifier_kernel(x_ref,
                           w_ih0_ref, w_hh0_ref, b0_ref,
                           w_ih1_ref, w_hh1_ref, b1_ref,
                           fc1_w_ref, fc1_b_ref,
                           fc2_w_ref, fc2_b_ref,
                           out_ref,
                           seq_ref):
    """Whole forward pass runs in VMEM (total resident footprint << 100 KiB)."""
    H = HIDDEN_SIZE
    B = BATCH
    T = SEQ

    def run_layer(pre_gates, w_hh_bf16, seq_out_ref):
        """pre_gates: (T*B, 4H) f32 = x_t @ W_ih + (b_ih + b_hh), already hoisted.
        Each step only does the recurrent h_prev @ W_hh matmul + elementwise gates."""
        h = jnp.zeros((B, H), jnp.float32)
        c = jnp.zeros((B, H), jnp.float32)
        for t in range(T):                               # static, fully unrolled (T=8)
            gates = pre_gates[t * B:(t + 1) * B, :] + jnp.dot(
                h.astype(jnp.bfloat16), w_hh_bf16,
                preferred_element_type=jnp.float32)      # (B, 4H) f32
            # full-vreg nonlinearities, slice afterwards (PyTorch gate order: i, f, g, o)
            sig = jax.nn.sigmoid(gates)
            th = jnp.tanh(gates)
            i_g = sig[:, 0 * H:1 * H]
            f_g = sig[:, 1 * H:2 * H]
            g_g = th[:, 2 * H:3 * H]
            o_g = sig[:, 3 * H:4 * H]
            c = f_g * c + i_g * g_g
            h = o_g * jnp.tanh(c)
            if seq_out_ref is not None:                  # only layer 0 needs its outputs
                seq_out_ref[t * B:(t + 1) * B, :] = h
        return h

    # ---- LSTM layer 0: hoisted input projection, one (T*B, D) @ (D, 4H) matmul ----
    pre0 = jnp.dot(x_ref[...], w_ih0_ref[...],
                   preferred_element_type=jnp.float32) + b0_ref[...]
    run_layer(pre0, w_hh0_ref[...], seq_ref)
    # TODO(synk): nn.LSTM applies dropout(p=0.2) between layers only in training mode;
    # eval-mode (inference) semantics are implemented here, i.e. dropout == identity.

    # ---- LSTM layer 1: hoisted input projection over the whole layer-0 sequence ----
    pre1 = jnp.dot(seq_ref[...].astype(jnp.bfloat16), w_ih1_ref[...],
                   preferred_element_type=jnp.float32) + b1_ref[...]
    hn = run_layer(pre1, w_hh1_ref[...], None)           # hn[-1]: (B, H)

    # ---- fc_1 -> ReLU -> fc_2 -> softmax(dim=1) ----
    fc1 = jnp.dot(hn.astype(jnp.bfloat16), fc1_w_ref[...],
                  preferred_element_type=jnp.float32) + fc1_b_ref[...]
    fc1 = jnp.maximum(fc1, 0.0)
    logits = jnp.dot(fc1.astype(jnp.bfloat16), fc2_w_ref[...],
                     preferred_element_type=jnp.float32) + fc2_b_ref[...]
    m = jnp.max(logits, axis=-1, keepdims=True)
    e = jnp.exp(logits - m)
    out_ref[...] = e / jnp.sum(e, axis=-1, keepdims=True)


def prepare_params(params):
    """One-time parameter transform: transpose to (in, out), fuse b_ih+b_hh, cast
    matmul operands to bf16. Done once, NOT per forward call."""
    (w_ih0, w_hh0, b_ih0, b_hh0,
     w_ih1, w_hh1, b_ih1, b_hh1,
     fc1_w, fc1_b, fc2_w, fc2_b) = params
    bf = jnp.bfloat16
    return (
        w_ih0.T.astype(bf), w_hh0.T.astype(bf), (b_ih0 + b_hh0)[None, :].astype(jnp.float32),
        w_ih1.T.astype(bf), w_hh1.T.astype(bf), (b_ih1 + b_hh1)[None, :].astype(jnp.float32),
        fc1_w.T.astype(bf), fc1_b[None, :].astype(jnp.float32),
        fc2_w.T.astype(bf), fc2_b[None, :].astype(jnp.float32),
    )


@jax.jit
def lstm_classifier_forward(x, prepared):
    # batch_first (B, T, D) -> time-major flattened (T*B, D), bf16 matmul operand.
    x_tm = jnp.transpose(x, (1, 0, 2)).reshape(SEQ * BATCH, INPUT_SIZE).astype(jnp.bfloat16)
    args = (x_tm,) + tuple(prepared)
    vmem = pl.BlockSpec(memory_space=pltpu.MemorySpace.VMEM)
    return pl.pallas_call(
        lstm_classifier_kernel,
        out_shape=jax.ShapeDtypeStruct((BATCH, OUTPUT_SIZE), jnp.float32),
        in_specs=[vmem] * len(args),
        out_specs=vmem,
        scratch_shapes=[
            pltpu.VMEM((SEQ * BATCH, HIDDEN_SIZE), jnp.float32),  # layer-0 output sequence
        ],
    )(*args)


def init_params(key):
    """Deterministic parameter init with PyTorch-like uniform ranges (f32 master copy)."""
    ks = jax.random.split(key, 12)
    k_lstm = 1.0 / jnp.sqrt(HIDDEN_SIZE)

    def u(k, shape, bound):
        return jax.random.uniform(k, shape, jnp.float32, -bound, bound)

    w_ih0 = u(ks[0], (4 * HIDDEN_SIZE, INPUT_SIZE), k_lstm)
    w_hh0 = u(ks[1], (4 * HIDDEN_SIZE, HIDDEN_SIZE), k_lstm)
    b_ih0 = u(ks[2], (4 * HIDDEN_SIZE,), k_lstm)
    b_hh0 = u(ks[3], (4 * HIDDEN_SIZE,), k_lstm)
    w_ih1 = u(ks[4], (4 * HIDDEN_SIZE, HIDDEN_SIZE), k_lstm)
    w_hh1 = u(ks[5], (4 * HIDDEN_SIZE, HIDDEN_SIZE), k_lstm)
    b_ih1 = u(ks[6], (4 * HIDDEN_SIZE,), k_lstm)
    b_hh1 = u(ks[7], (4 * HIDDEN_SIZE,), k_lstm)
    k_fc1 = 1.0 / jnp.sqrt(HIDDEN_SIZE)
    fc1_w = u(ks[8], (FC1_SIZE, HIDDEN_SIZE), k_fc1)
    fc1_b = u(ks[9], (FC1_SIZE,), k_fc1)
    k_fc2 = 1.0 / jnp.sqrt(FC1_SIZE)
    fc2_w = u(ks[10], (OUTPUT_SIZE, FC1_SIZE), k_fc2)
    fc2_b = u(ks[11], (OUTPUT_SIZE,), k_fc2)
    return (w_ih0, w_hh0, b_ih0, b_hh0, w_ih1, w_hh1, b_ih1, b_hh1,
            fc1_w, fc1_b, fc2_w, fc2_b)


def reference_forward(x, params):
    """Pure-JAX f32 reference matching PyTorch LSTMClassifier.forward (eval mode)."""
    (w_ih0, w_hh0, b_ih0, b_hh0,
     w_ih1, w_hh1, b_ih1, b_hh1,
     fc1_w, fc1_b, fc2_w, fc2_b) = params
    H = HIDDEN_SIZE

    def run_layer(seq, w_ih, w_hh, b_ih, b_hh):
        B = seq.shape[0]
        h = jnp.zeros((B, H), jnp.float32)
        c = jnp.zeros((B, H), jnp.float32)
        outs = []
        for t in range(seq.shape[1]):
            g = seq[:, t, :] @ w_ih.T + h @ w_hh.T + b_ih + b_hh
            i = jax.nn.sigmoid(g[:, 0 * H:1 * H])
            f = jax.nn.sigmoid(g[:, 1 * H:2 * H])
            gg = jnp.tanh(g[:, 2 * H:3 * H])
            o = jax.nn.sigmoid(g[:, 3 * H:4 * H])
            c = f * c + i * gg
            h = o * jnp.tanh(c)
            outs.append(h)
        return jnp.stack(outs, axis=1), h

    seq1, _ = run_layer(x, w_ih0, w_hh0, b_ih0, b_hh0)
    _, hn = run_layer(seq1, w_ih1, w_hh1, b_ih1, b_hh1)
    out = jnp.maximum(hn @ fc1_w.T + fc1_b, 0.0)
    logits = out @ fc2_w.T + fc2_b
    return jax.nn.softmax(logits, axis=1)


if __name__ == "__main__":
    key = jax.random.PRNGKey(0)
    k_x, k_p = jax.random.split(key)
    x = jax.random.normal(k_x, (BATCH, SEQ, INPUT_SIZE), jnp.float32)   # batch_first input
    params = init_params(k_p)
    prepared = prepare_params(params)                                   # one-time transform

    out = lstm_classifier_forward(x, prepared)
    out = jax.block_until_ready(out)

    ref = reference_forward(x, params)
    assert out.shape == (BATCH, OUTPUT_SIZE)
    # Tolerance loosened vs the all-f32 version: matmul operands are bf16 (f32 accumulate,
    # f32 state), so softmax outputs drift by a few 1e-3 at most over T=8 steps.
    assert bool(jnp.allclose(out, ref, atol=1e-2, rtol=1e-2)), "mismatch vs reference"

    print("KERNEL_OK")
</pallas_src>

<mosaic_0001>
module attributes {stable_mosaic.version = 11 : i64} {
  func.func @lstm_classifier_kernel(%arg0: memref<64x16xbf16, #tpu.memory_space<vmem>>, %arg1: memref<16x128xbf16, #tpu.memory_space<vmem>>, %arg2: memref<32x128xbf16, #tpu.memory_space<vmem>>, %arg3: memref<1x128xf32, #tpu.memory_space<vmem>>, %arg4: memref<32x128xbf16, #tpu.memory_space<vmem>>, %arg5: memref<32x128xbf16, #tpu.memory_space<vmem>>, %arg6: memref<1x128xf32, #tpu.memory_space<vmem>>, %arg7: memref<32x128xbf16, #tpu.memory_space<vmem>>, %arg8: memref<1x128xf32, #tpu.memory_space<vmem>>, %arg9: memref<128x4xbf16, #tpu.memory_space<vmem>>, %arg10: memref<1x4xf32, #tpu.memory_space<vmem>>, %arg11: memref<8x4xf32, #tpu.memory_space<vmem>>, %arg12: memref<64x32xf32, #tpu.memory_space<vmem>>) attributes {dimension_semantics = [], scalar_prefetch = 0 : i64, scratch_operands = 1 : i64, tpu.core_type = #tpu.core_type<tc>} {
    %c0 = arith.constant 0 : index
    %c0_0 = arith.constant 0 : index
    %0 = vector.load %arg0[%c0, %c0_0] : memref<64x16xbf16, #tpu.memory_space<vmem>>, vector<64x16xbf16>
    %c0_1 = arith.constant 0 : index
    %c0_2 = arith.constant 0 : index
    %1 = vector.load %arg1[%c0_1, %c0_2] : memref<16x128xbf16, #tpu.memory_space<vmem>>, vector<16x128xbf16>
    %cst = arith.constant dense<0.000000e+00> : vector<64x128xf32>
    %2 = tpu.matmul %0, %1, %cst {dimension_numbers = #tpu.dot_dimension_numbers<[1], [0], [0], [1], [0, 0, 1, 1], [], []>} : vector<64x16xbf16>, vector<16x128xbf16>, vector<64x128xf32> -> vector<64x128xf32>
    %c0_3 = arith.constant 0 : index
    %c0_4 = arith.constant 0 : index
    %3 = vector.load %arg3[%c0_3, %c0_4] : memref<1x128xf32, #tpu.memory_space<vmem>>, vector<1x128xf32>
    %4 = vector.broadcast %3 : vector<1x128xf32> to vector<64x128xf32>
    %5 = arith.addf %2, %4 : vector<64x128xf32>
    %c0_5 = arith.constant 0 : index
    %c0_6 = arith.constant 0 : index
    %6 = vector.load %arg2[%c0_5, %c0_6] : memref<32x128xbf16, #tpu.memory_space<vmem>>, vector<32x128xbf16>
    %cst_7 = arith.constant 0.000000e+00 : f32
    %7 = vector.broadcast %cst_7 : f32 to vector<8x32xf32>
    %cst_8 = arith.constant 0.000000e+00 : f32
    %8 = vector.broadcast %cst_8 : f32 to vector<8x32xf32>
    %9 = vector.extract_strided_slice %5 {offsets = [0, 0], sizes = [8, 128], strides = [1, 1]} : vector<64x128xf32> to vector<8x128xf32>
    %10 = arith.truncf %7 : vector<8x32xf32> to vector<8x32xbf16>
    %cst_9 = arith.constant dense<0.000000e+00> : vector<8x128xf32>
    %11 = tpu.matmul %10, %6, %cst_9 {dimension_numbers = #tpu.dot_dimension_numbers<[1], [0], [0], [1], [0, 0, 1, 1], [], []>} : vector<8x32xbf16>, vector<32x128xbf16>, vector<8x128xf32> -> vector<8x128xf32>
    %12 = arith.addf %9, %11 : vector<8x128xf32>
    %13 = arith.negf %12 : vector<8x128xf32>
    %14 = math.exp %13 : vector<8x128xf32>
    %cst_10 = arith.constant 1.000000e+00 : f32
    %15 = vector.broadcast %cst_10 : f32 to vector<8x128xf32>
    %16 = arith.addf %15, %14 : vector<8x128xf32>
    %17 = arith.divf %15, %16 : vector<8x128xf32>
    %18 = math.tanh %12 : vector<8x128xf32>
    %19 = vector.extract_strided_slice %17 {offsets = [0, 0], sizes = [8, 32], strides = [1, 1]} : vector<8x128xf32> to vector<8x32xf32>
    %20 = vector.extract_strided_slice %17 {offsets = [0, 32], sizes = [8, 32], strides = [1, 1]} : vector<8x128xf32> to vector<8x32xf32>
    %21 = vector.extract_strided_slice %18 {offsets = [0, 64], sizes = [8, 32], strides = [1, 1]} : vector<8x128xf32> to vector<8x32xf32>
    %22 = vector.extract_strided_slice %17 {offsets = [0, 96], sizes = [8, 32], strides = [1, 1]} : vector<8x128xf32> to vector<8x32xf32>
    %23 = arith.mulf %20, %8 : vector<8x32xf32>
    %24 = arith.mulf %19, %21 : vector<8x32xf32>
    %25 = arith.addf %23, %24 : vector<8x32xf32>
    %26 = math.tanh %25 : vector<8x32xf32>
    %27 = arith.mulf %22, %26 : vector<8x32xf32>
    %c0_11 = arith.constant 0 : index
    %c0_12 = arith.constant 0 : index
    %28 = vector.load %arg12[%c0_11, %c0_12] : memref<64x32xf32, #tpu.memory_space<vmem>>, vector<8x32xf32>
    tpu.vector_store %arg12[%c0_11, %c0_12], %27 {strides = array<i32>} : memref<64x32xf32, #tpu.memory_space<vmem>>, vector<8x32xf32>,
    %29 = vector.extract_strided_slice %5 {offsets = [8, 0], sizes = [8, 128], strides = [1, 1]} : vector<64x128xf32> to vector<8x128xf32>
    %30 = arith.truncf %27 : vector<8x32xf32> to vector<8x32xbf16>
    %cst_13 = arith.constant dense<0.000000e+00> : vector<8x128xf32>
    %31 = tpu.matmul %30, %6, %cst_13 {dimension_numbers = #tpu.dot_dimension_numbers<[1], [0], [0], [1], [0, 0, 1, 1], [], []>} : vector<8x32xbf16>, vector<32x128xbf16>, vector<8x128xf32> -> vector<8x128xf32>
    %32 = arith.addf %29, %31 : vector<8x128xf32>
    %33 = arith.negf %32 : vector<8x128xf32>
    %34 = math.exp %33 : vector<8x128xf32>
    %cst_14 = arith.constant 1.000000e+00 : f32
    %35 = vector.broadcast %cst_14 : f32 to vector<8x128xf32>
    %36 = arith.addf %35, %34 : vector<8x128xf32>
    %37 = arith.divf %35, %36 : vector<8x128xf32>
    %38 = math.tanh %32 : vector<8x128xf32>
    %39 = vector.extract_strided_slice %37 {offsets = [0, 0], sizes = [8, 32], strides = [1, 1]} : vector<8x128xf32> to vector<8x32xf32>
    %40 = vector.extract_strided_slice %37 {offsets = [0, 32], sizes = [8, 32], strides = [1, 1]} : vector<8x128xf32> to vector<8x32xf32>
    %41 = vector.extract_strided_slice %38 {offsets = [0, 64], sizes = [8, 32], strides = [1, 1]} : vector<8x128xf32> to vector<8x32xf32>
    %42 = vector.extract_strided_slice %37 {offsets = [0, 96], sizes = [8, 32], strides = [1, 1]} : vector<8x128xf32> to vector<8x32xf32>
    %43 = arith.mulf %40, %25 : vector<8x32xf32>
    %44 = arith.mulf %39, %41 : vector<8x32xf32>
    %45 = arith.addf %43, %44 : vector<8x32xf32>
    %46 = math.tanh %45 : vector<8x32xf32>
    %47 = arith.mulf %42, %46 : vector<8x32xf32>
    %c8 = arith.constant 8 : index
    %c0_15 = arith.constant 0 : index
    %48 = vector.load %arg12[%c8, %c0_15] : memref<64x32xf32, #tpu.memory_space<vmem>>, vector<8x32xf32>
    tpu.vector_store %arg12[%c8, %c0_15], %47 {strides = array<i32>} : memref<64x32xf32, #tpu.memory_space<vmem>>, vector<8x32xf32>,
    %49 = vector.extract_strided_slice %5 {offsets = [16, 0], sizes = [8, 128], strides = [1, 1]} : vector<64x128xf32> to vector<8x128xf32>
    %50 = arith.truncf %47 : vector<8x32xf32> to vector<8x32xbf16>
    %cst_16 = arith.constant dense<0.000000e+00> : vector<8x128xf32>
    %51 = tpu.matmul %50, %6, %cst_16 {dimension_numbers = #tpu.dot_dimension_numbers<[1], [0], [0], [1], [0, 0, 1, 1], [], []>} : vector<8x32xbf16>, vector<32x128xbf16>, vector<8x128xf32> -> vector<8x128xf32>
    %52 = arith.addf %49, %51 : vector<8x128xf32>
    %53 = arith.negf %52 : vector<8x128xf32>
    %54 = math.exp %53 : vector<8x128xf32>
    %cst_17 = arith.constant 1.000000e+00 : f32
    %55 = vector.broadcast %cst_17 : f32 to vector<8x128xf32>
    %56 = arith.addf %55, %54 : vector<8x128xf32>
    %57 = arith.divf %55, %56 : vector<8x128xf32>
    %58 = math.tanh %52 : vector<8x128xf32>
    %59 = vector.extract_strided_slice %57 {offsets = [0, 0], sizes = [8, 32], strides = [1, 1]} : vector<8x128xf32> to vector<8x32xf32>
    %60 = vector.extract_strided_slice %57 {offsets = [0, 32], sizes = [8, 32], strides = [1, 1]} : vector<8x128xf32> to vector<8x32xf32>
    %61 = vector.extract_strided_slice %58 {offsets = [0, 64], sizes = [8, 32], strides = [1, 1]} : vector<8x128xf32> to vector<8x32xf32>
    %62 = vector.extract_strided_slice %57 {offsets = [0, 96], sizes = [8, 32], strides = [1, 1]} : vector<8x128xf32> to vector<8x32xf32>
    %63 = arith.mulf %60, %45 : vector<8x32xf32>
    %64 = arith.mulf %59, %61 : vector<8x32xf32>
    %65 = arith.addf %63, %64 : vector<8x32xf32>
    %66 = math.tanh %65 : vector<8x32xf32>
    %67 = arith.mulf %62, %66 : vector<8x32xf32>
    %c16 = arith.constant 16 : index
    %c0_18 = arith.constant 0 : index
    %68 = vector.load %arg12[%c16, %c0_18] : memref<64x32xf32, #tpu.memory_space<vmem>>, vector<8x32xf32>
    tpu.vector_store %arg12[%c16, %c0_18], %67 {strides = array<i32>} : memref<64x32xf32, #tpu.memory_space<vmem>>, vector<8x32xf32>,
    %69 = vector.extract_strided_slice %5 {offsets = [24, 0], sizes = [8, 128], strides = [1, 1]} : vector<64x128xf32> to vector<8x128xf32>
    %70 = arith.truncf %67 : vector<8x32xf32> to vector<8x32xbf16>
    %cst_19 = arith.constant dense<0.000000e+00> : vector<8x128xf32>
    %71 = tpu.matmul %70, %6, %cst_19 {dimension_numbers = #tpu.dot_dimension_numbers<[1], [0], [0], [1], [0, 0, 1, 1], [], []>} : vector<8x32xbf16>, vector<32x128xbf16>, vector<8x128xf32> -> vector<8x128xf32>
    %72 = arith.addf %69, %71 : vector<8x128xf32>
    %73 = arith.negf %72 : vector<8x128xf32>
    %74 = math.exp %73 : vector<8x128xf32>
    %cst_20 = arith.constant 1.000000e+00 : f32
    %75 = vector.broadcast %cst_20 : f32 to vector<8x128xf32>
    %76 = arith.addf %75, %74 : vector<8x128xf32>
    %77 = arith.divf %75, %76 : vector<8x128xf32>
    %78 = math.tanh %72 : vector<8x128xf32>
    %79 = vector.extract_strided_slice %77 {offsets = [0, 0], sizes = [8, 32], strides = [1, 1]} : vector<8x128xf32> to vector<8x32xf32>
    %80 = vector.extract_strided_slice %77 {offsets = [0, 32], sizes = [8, 32], strides = [1, 1]} : vector<8x128xf32> to vector<8x32xf32>
    %81 = vector.extract_strided_slice %78 {offsets = [0, 64], sizes = [8, 32], strides = [1, 1]} : vector<8x128xf32> to vector<8x32xf32>
    %82 = vector.extract_strided_slice %77 {offsets = [0, 96], sizes = [8, 32], strides = [1, 1]} : vector<8x128xf32> to vector<8x32xf32>
    %83 = arith.mulf %80, %65 : vector<8x32xf32>
    %84 = arith.mulf %79, %81 : vector<8x32xf32>
    %85 = arith.addf %83, %84 : vector<8x32xf32>
    %86 = math.tanh %85 : vector<8x32xf32>
    %87 = arith.mulf %82, %86 : vector<8x32xf32>
    %c24 = arith.constant 24 : index
    %c0_21 = arith.constant 0 : index
    %88 = vector.load %arg12[%c24, %c0_21] : memref<64x32xf32, #tpu.memory_space<vmem>>, vector<8x32xf32>
    tpu.vector_store %arg12[%c24, %c0_21], %87 {strides = array<i32>} : memref<64x32xf32, #tpu.memory_space<vmem>>, vector<8x32xf32>,
    %89 = vector.extract_strided_slice %5 {offsets = [32, 0], sizes = [8, 128], strides = [1, 1]} : vector<64x128xf32> to vector<8x128xf32>
    %90 = arith.truncf %87 : vector<8x32xf32> to vector<8x32xbf16>
    %cst_22 = arith.constant dense<0.000000e+00> : vector<8x128xf32>
    %91 = tpu.matmul %90, %6, %cst_22 {dimension_numbers = #tpu.dot_dimension_numbers<[1], [0], [0], [1], [0, 0, 1, 1], [], []>} : vector<8x32xbf16>, vector<32x128xbf16>, vector<8x128xf32> -> vector<8x128xf32>
    %92 = arith.addf %89, %91 : vector<8x128xf32>
    %93 = arith.negf %92 : vector<8x128xf32>
    %94 = math.exp %93 : vector<8x128xf32>
    %cst_23 = arith.constant 1.000000e+00 : f32
    %95 = vector.broadcast %cst_23 : f32 to vector<8x128xf32>
    %96 = arith.addf %95, %94 : vector<8x128xf32>
    %97 = arith.divf %95, %96 : vector<8x128xf32>
    %98 = math.tanh %92 : vector<8x128xf32>
    %99 = vector.extract_strided_slice %97 {offsets = [0, 0], sizes = [8, 32], strides = [1, 1]} : vector<8x128xf32> to vector<8x32xf32>
    %100 = vector.extract_strided_slice %97 {offsets = [0, 32], sizes = [8, 32], strides = [1, 1]} : vector<8x128xf32> to vector<8x32xf32>
    %101 = vector.extract_strided_slice %98 {offsets = [0, 64], sizes = [8, 32], strides = [1, 1]} : vector<8x128xf32> to vector<8x32xf32>
    %102 = vector.extract_strided_slice %97 {offsets = [0, 96], sizes = [8, 32], strides = [1, 1]} : vector<8x128xf32> to vector<8x32xf32>
    %103 = arith.mulf %100, %85 : vector<8x32xf32>
    %104 = arith.mulf %99, %101 : vector<8x32xf32>
    %105 = arith.addf %103, %104 : vector<8x32xf32>
    %106 = math.tanh %105 : vector<8x32xf32>
    %107 = arith.mulf %102, %106 : vector<8x32xf32>
    %c32 = arith.constant 32 : index
    %c0_24 = arith.constant 0 : index
    %108 = vector.load %arg12[%c32, %c0_24] : memref<64x32xf32, #tpu.memory_space<vmem>>, vector<8x32xf32>
    tpu.vector_store %arg12[%c32, %c0_24], %107 {strides = array<i32>} : memref<64x32xf32, #tpu.memory_space<vmem>>, vector<8x32xf32>,
    %109 = vector.extract_strided_slice %5 {offsets = [40, 0], sizes = [8, 128], strides = [1, 1]} : vector<64x128xf32> to vector<8x128xf32>
    %110 = arith.truncf %107 : vector<8x32xf32> to vector<8x32xbf16>
    %cst_25 = arith.constant dense<0.000000e+00> : vector<8x128xf32>
    %111 = tpu.matmul %110, %6, %cst_25 {dimension_numbers = #tpu.dot_dimension_numbers<[1], [0], [0], [1], [0, 0, 1, 1], [], []>} : vector<8x32xbf16>, vector<32x128xbf16>, vector<8x128xf32> -> vector<8x128xf32>
    %112 = arith.addf %109, %111 : vector<8x128xf32>
    %113 = arith.negf %112 : vector<8x128xf32>
    %114 = math.exp %113 : vector<8x128xf32>
    %cst_26 = arith.constant 1.000000e+00 : f32
    %115 = vector.broadcast %cst_26 : f32 to vector<8x128xf32>
    %116 = arith.addf %115, %114 : vector<8x128xf32>
    %117 = arith.divf %115, %116 : vector<8x128xf32>
    %118 = math.tanh %112 : vector<8x128xf32>
    %119 = vector.extract_strided_slice %117 {offsets = [0, 0], sizes = [8, 32], strides = [1, 1]} : vector<8x128xf32> to vector<8x32xf32>
    %120 = vector.extract_strided_slice %117 {offsets = [0, 32], sizes = [8, 32], strides = [1, 1]} : vector<8x128xf32> to vector<8x32xf32>
    %121 = vector.extract_strided_slice %118 {offsets = [0, 64], sizes = [8, 32], strides = [1, 1]} : vector<8x128xf32> to vector<8x32xf32>
    %122 = vector.extract_strided_slice %117 {offsets = [0, 96], sizes = [8, 32], strides = [1, 1]} : vector<8x128xf32> to vector<8x32xf32>
    %123 = arith.mulf %120, %105 : vector<8x32xf32>
    %124 = arith.mulf %119, %121 : vector<8x32xf32>
    %125 = arith.addf %123, %124 : vector<8x32xf32>
    %126 = math.tanh %125 : vector<8x32xf32>
    %127 = arith.mulf %122, %126 : vector<8x32xf32>
    %c40 = arith.constant 40 : index
    %c0_27 = arith.constant 0 : index
    %128 = vector.load %arg12[%c40, %c0_27] : memref<64x32xf32, #tpu.memory_space<vmem>>, vector<8x32xf32>
    tpu.vector_store %arg12[%c40, %c0_27], %127 {strides = array<i32>} : memref<64x32xf32, #tpu.memory_space<vmem>>, vector<8x32xf32>,
    %129 = vector.extract_strided_slice %5 {offsets = [48, 0], sizes = [8, 128], strides = [1, 1]} : vector<64x128xf32> to vector<8x128xf32>
    %130 = arith.truncf %127 : vector<8x32xf32> to vector<8x32xbf16>
    %cst_28 = arith.constant dense<0.000000e+00> : vector<8x128xf32>
    %131 = tpu.matmul %130, %6, %cst_28 {dimension_numbers = #tpu.dot_dimension_numbers<[1], [0], [0], [1], [0, 0, 1, 1], [], []>} : vector<8x32xbf16>, vector<32x128xbf16>, vector<8x128xf32> -> vector<8x128xf32>
    %132 = arith.addf %129, %131 : vector<8x128xf32>
    %133 = arith.negf %132 : vector<8x128xf32>
    %134 = math.exp %133 : vector<8x128xf32>
    %cst_29 = arith.constant 1.000000e+00 : f32
    %135 = vector.broadcast %cst_29 : f32 to vector<8x128xf32>
    %136 = arith.addf %135, %134 : vector<8x128xf32>
    %137 = arith.divf %135, %136 : vector<8x128xf32>
    %138 = math.tanh %132 : vector<8x128xf32>
    %139 = vector.extract_strided_slice %137 {offsets = [0, 0], sizes = [8, 32], strides = [1, 1]} : vector<8x128xf32> to vector<8x32xf32>
    %140 = vector.extract_strided_slice %137 {offsets = [0, 32], sizes = [8, 32], strides = [1, 1]} : vector<8x128xf32> to vector<8x32xf32>
    %141 = vector.extract_strided_slice %138 {offsets = [0, 64], sizes = [8, 32], strides = [1, 1]} : vector<8x128xf32> to vector<8x32xf32>
    %142 = vector.extract_strided_slice %137 {offsets = [0, 96], sizes = [8, 32], strides = [1, 1]} : vector<8x128xf32> to vector<8x32xf32>
    %143 = arith.mulf %140, %125 : vector<8x32xf32>
    %144 = arith.mulf %139, %141 : vector<8x32xf32>
    %145 = arith.addf %143, %144 : vector<8x32xf32>
    %146 = math.tanh %145 : vector<8x32xf32>
    %147 = arith.mulf %142, %146 : vector<8x32xf32>
    %c48 = arith.constant 48 : index
    %c0_30 = arith.constant 0 : index
    %148 = vector.load %arg12[%c48, %c0_30] : memref<64x32xf32, #tpu.memory_space<vmem>>, vector<8x32xf32>
    tpu.vector_store %arg12[%c48, %c0_30], %147 {strides = array<i32>} : memref<64x32xf32, #tpu.memory_space<vmem>>, vector<8x32xf32>,
    %149 = vector.extract_strided_slice %5 {offsets = [56, 0], sizes = [8, 128], strides = [1, 1]} : vector<64x128xf32> to vector<8x128xf32>
    %150 = arith.truncf %147 : vector<8x32xf32> to vector<8x32xbf16>
    %cst_31 = arith.constant dense<0.000000e+00> : vector<8x128xf32>
    %151 = tpu.matmul %150, %6, %cst_31 {dimension_numbers = #tpu.dot_dimension_numbers<[1], [0], [0], [1], [0, 0, 1, 1], [], []>} : vector<8x32xbf16>, vector<32x128xbf16>, vector<8x128xf32> -> vector<8x128xf32>
    %152 = arith.addf %149, %151 : vector<8x128xf32>
    %153 = arith.negf %152 : vector<8x128xf32>
    %154 = math.exp %153 : vector<8x128xf32>
    %cst_32 = arith.constant 1.000000e+00 : f32
    %155 = vector.broadcast %cst_32 : f32 to vector<8x128xf32>
    %156 = arith.addf %155, %154 : vector<8x128xf32>
    %157 = arith.divf %155, %156 : vector<8x128xf32>
    %158 = math.tanh %152 : vector<8x128xf32>
    %159 = vector.extract_strided_slice %157 {offsets = [0, 0], sizes = [8, 32], strides = [1, 1]} : vector<8x128xf32> to vector<8x32xf32>
    %160 = vector.extract_strided_slice %157 {offsets = [0, 32], sizes = [8, 32], strides = [1, 1]} : vector<8x128xf32> to vector<8x32xf32>
    %161 = vector.extract_strided_slice %158 {offsets = [0, 64], sizes = [8, 32], strides = [1, 1]} : vector<8x128xf32> to vector<8x32xf32>
    %162 = vector.extract_strided_slice %157 {offsets = [0, 96], sizes = [8, 32], strides = [1, 1]} : vector<8x128xf32> to vector<8x32xf32>
    %163 = arith.mulf %160, %145 : vector<8x32xf32>
    %164 = arith.mulf %159, %161 : vector<8x32xf32>
    %165 = arith.addf %163, %164 : vector<8x32xf32>
    %166 = math.tanh %165 : vector<8x32xf32>
    %167 = arith.mulf %162, %166 : vector<8x32xf32>
    %c56 = arith.constant 56 : index
    %c0_33 = arith.constant 0 : index
    %168 = vector.load %arg12[%c56, %c0_33] : memref<64x32xf32, #tpu.memory_space<vmem>>, vector<8x32xf32>
    tpu.vector_store %arg12[%c56, %c0_33], %167 {strides = array<i32>} : memref<64x32xf32, #tpu.memory_space<vmem>>, vector<8x32xf32>,
    %c0_34 = arith.constant 0 : index
    %c0_35 = arith.constant 0 : index
    %169 = vector.load %arg12[%c0_34, %c0_35] : memref<64x32xf32, #tpu.memory_space<vmem>>, vector<64x32xf32>
    %170 = arith.truncf %169 : vector<64x32xf32> to vector<64x32xbf16>
    %c0_36 = arith.constant 0 : index
    %c0_37 = arith.constant 0 : index
    %171 = vector.load %arg4[%c0_36, %c0_37] : memref<32x128xbf16, #tpu.memory_space<vmem>>, vector<32x128xbf16>
    %cst_38 = arith.constant dense<0.000000e+00> : vector<64x128xf32>
    %172 = tpu.matmul %170, %171, %cst_38 {dimension_numbers = #tpu.dot_dimension_numbers<[1], [0], [0], [1], [0, 0, 1, 1], [], []>} : vector<64x32xbf16>, vector<32x128xbf16>, vector<64x128xf32> -> vector<64x128xf32>
    %c0_39 = arith.constant 0 : index
    %c0_40 = arith.constant 0 : index
    %173 = vector.load %arg6[%c0_39, %c0_40] : memref<1x128xf32, #tpu.memory_space<vmem>>, vector<1x128xf32>
    %174 = vector.broadcast %173 : vector<1x128xf32> to vector<64x128xf32>
    %175 = arith.addf %172, %174 : vector<64x128xf32>
    %c0_41 = arith.constant 0 : index
    %c0_42 = arith.constant 0 : index
    %176 = vector.load %arg5[%c0_41, %c0_42] : memref<32x128xbf16, #tpu.memory_space<vmem>>, vector<32x128xbf16>
    %cst_43 = arith.constant 0.000000e+00 : f32
    %177 = vector.broadcast %cst_43 : f32 to vector<8x32xf32>
    %cst_44 = arith.constant 0.000000e+00 : f32
    %178 = vector.broadcast %cst_44 : f32 to vector<8x32xf32>
    %179 = vector.extract_strided_slice %175 {offsets = [0, 0], sizes = [8, 128], strides = [1, 1]} : vector<64x128xf32> to vector<8x128xf32>
    %180 = arith.truncf %177 : vector<8x32xf32> to vector<8x32xbf16>
    %cst_45 = arith.constant dense<0.000000e+00> : vector<8x128xf32>
    %181 = tpu.matmul %180, %176, %cst_45 {dimension_numbers = #tpu.dot_dimension_numbers<[1], [0], [0], [1], [0, 0, 1, 1], [], []>} : vector<8x32xbf16>, vector<32x128xbf16>, vector<8x128xf32> -> vector<8x128xf32>
    %182 = arith.addf %179, %181 : vector<8x128xf32>
    %183 = arith.negf %182 : vector<8x128xf32>
    %184 = math.exp %183 : vector<8x128xf32>
    %cst_46 = arith.constant 1.000000e+00 : f32
    %185 = vector.broadcast %cst_46 : f32 to vector<8x128xf32>
    %186 = arith.addf %185, %184 : vector<8x128xf32>
    %187 = arith.divf %185, %186 : vector<8x128xf32>
    %188 = math.tanh %182 : vector<8x128xf32>
    %189 = vector.extract_strided_slice %187 {offsets = [0, 0], sizes = [8, 32], strides = [1, 1]} : vector<8x128xf32> to vector<8x32xf32>
    %190 = vector.extract_strided_slice %187 {offsets = [0, 32], sizes = [8, 32], strides = [1, 1]} : vector<8x128xf32> to vector<8x32xf32>
    %191 = vector.extract_strided_slice %188 {offsets = [0, 64], sizes = [8, 32], strides = [1, 1]} : vector<8x128xf32> to vector<8x32xf32>
    %192 = vector.extract_strided_slice %187 {offsets = [0, 96], sizes = [8, 32], strides = [1, 1]} : vector<8x128xf32> to vector<8x32xf32>
    %193 = arith.mulf %190, %178 : vector<8x32xf32>
    %194 = arith.mulf %189, %191 : vector<8x32xf32>
    %195 = arith.addf %193, %194 : vector<8x32xf32>
    %196 = math.tanh %195 : vector<8x32xf32>
    %197 = arith.mulf %192, %196 : vector<8x32xf32>
    %198 = vector.extract_strided_slice %175 {offsets = [8, 0], sizes = [8, 128], strides = [1, 1]} : vector<64x128xf32> to vector<8x128xf32>
    %199 = arith.truncf %197 : vector<8x32xf32> to vector<8x32xbf16>
    %cst_47 = arith.constant dense<0.000000e+00> : vector<8x128xf32>
    %200 = tpu.matmul %199, %176, %cst_47 {dimension_numbers = #tpu.dot_dimension_numbers<[1], [0], [0], [1], [0, 0, 1, 1], [], []>} : vector<8x32xbf16>, vector<32x128xbf16>, vector<8x128xf32> -> vector<8x128xf32>
    %201 = arith.addf %198, %200 : vector<8x128xf32>
    %202 = arith.negf %201 : vector<8x128xf32>
    %203 = math.exp %202 : vector<8x128xf32>
    %cst_48 = arith.constant 1.000000e+00 : f32
    %204 = vector.broadcast %cst_48 : f32 to vector<8x128xf32>
    %205 = arith.addf %204, %203 : vector<8x128xf32>
    %206 = arith.divf %204, %205 : vector<8x128xf32>
    %207 = math.tanh %201 : vector<8x128xf32>
    %208 = vector.extract_strided_slice %206 {offsets = [0, 0], sizes = [8, 32], strides = [1, 1]} : vector<8x128xf32> to vector<8x32xf32>
    %209 = vector.extract_strided_slice %206 {offsets = [0, 32], sizes = [8, 32], strides = [1, 1]} : vector<8x128xf32> to vector<8x32xf32>
    %210 = vector.extract_strided_slice %207 {offsets = [0, 64], sizes = [8, 32], strides = [1, 1]} : vector<8x128xf32> to vector<8x32xf32>
    %211 = vector.extract_strided_slice %206 {offsets = [0, 96], sizes = [8, 32], strides = [1, 1]} : vector<8x128xf32> to vector<8x32xf32>
    %212 = arith.mulf %209, %195 : vector<8x32xf32>
    %213 = arith.mulf %208, %210 : vector<8x32xf32>
    %214 = arith.addf %212, %213 : vector<8x32xf32>
    %215 = math.tanh %214 : vector<8x32xf32>
    %216 = arith.mulf %211, %215 : vector<8x32xf32>
    %217 = vector.extract_strided_slice %175 {offsets = [16, 0], sizes = [8, 128], strides = [1, 1]} : vector<64x128xf32> to vector<8x128xf32>
    %218 = arith.truncf %216 : vector<8x32xf32> to vector<8x32xbf16>
    %cst_49 = arith.constant dense<0.000000e+00> : vector<8x128xf32>
    %219 = tpu.matmul %218, %176, %cst_49 {dimension_numbers = #tpu.dot_dimension_numbers<[1], [0], [0], [1], [0, 0, 1, 1], [], []>} : vector<8x32xbf16>, vector<32x128xbf16>, vector<8x128xf32> -> vector<8x128xf32>
    %220 = arith.addf %217, %219 : vector<8x128xf32>
    %221 = arith.negf %220 : vector<8x128xf32>
    %222 = math.exp %221 : vector<8x128xf32>
    %cst_50 = arith.constant 1.000000e+00 : f32
    %223 = vector.broadcast %cst_50 : f32 to vector<8x128xf32>
    %224 = arith.addf %223, %222 : vector<8x128xf32>
    %225 = arith.divf %223, %224 : vector<8x128xf32>
    %226 = math.tanh %220 : vector<8x128xf32>
    %227 = vector.extract_strided_slice %225 {offsets = [0, 0], sizes = [8, 32], strides = [1, 1]} : vector<8x128xf32> to vector<8x32xf32>
    %228 = vector.extract_strided_slice %225 {offsets = [0, 32], sizes = [8, 32], strides = [1, 1]} : vector<8x128xf32> to vector<8x32xf32>
    %229 = vector.extract_strided_slice %226 {offsets = [0, 64], sizes = [8, 32], strides = [1, 1]} : vector<8x128xf32> to vector<8x32xf32>
    %230 = vector.extract_strided_slice %225 {offsets = [0, 96], sizes = [8, 32], strides = [1, 1]} : vector<8x128xf32> to vector<8x32xf32>
    %231 = arith.mulf %228, %214 : vector<8x32xf32>
    %232 = arith.mulf %227, %229 : vector<8x32xf32>
    %233 = arith.addf %231, %232 : vector<8x32xf32>
    %234 = math.tanh %233 : vector<8x32xf32>
    %235 = arith.mulf %230, %234 : vector<8x32xf32>
    %236 = vector.extract_strided_slice %175 {offsets = [24, 0], sizes = [8, 128], strides = [1, 1]} : vector<64x128xf32> to vector<8x128xf32>
    %237 = arith.truncf %235 : vector<8x32xf32> to vector<8x32xbf16>
    %cst_51 = arith.constant dense<0.000000e+00> : vector<8x128xf32>
    %238 = tpu.matmul %237, %176, %cst_51 {dimension_numbers = #tpu.dot_dimension_numbers<[1], [0], [0], [1], [0, 0, 1, 1], [], []>} : vector<8x32xbf16>, vector<32x128xbf16>, vector<8x128xf32> -> vector<8x128xf32>
    %239 = arith.addf %236, %238 : vector<8x128xf32>
    %240 = arith.negf %239 : vector<8x128xf32>
    %241 = math.exp %240 : vector<8x128xf32>
    %cst_52 = arith.constant 1.000000e+00 : f32
    %242 = vector.broadcast %cst_52 : f32 to vector<8x128xf32>
    %243 = arith.addf %242, %241 : vector<8x128xf32>
    %244 = arith.divf %242, %243 : vector<8x128xf32>
    %245 = math.tanh %239 : vector<8x128xf32>
    %246 = vector.extract_strided_slice %244 {offsets = [0, 0], sizes = [8, 32], strides = [1, 1]} : vector<8x128xf32> to vector<8x32xf32>
    %247 = vector.extract_strided_slice %244 {offsets = [0, 32], sizes = [8, 32], strides = [1, 1]} : vector<8x128xf32> to vector<8x32xf32>
    %248 = vector.extract_strided_slice %245 {offsets = [0, 64], sizes = [8, 32], strides = [1, 1]} : vector<8x128xf32> to vector<8x32xf32>
    %249 = vector.extract_strided_slice %244 {offsets = [0, 96], sizes = [8, 32], strides = [1, 1]} : vector<8x128xf32> to vector<8x32xf32>
    %250 = arith.mulf %247, %233 : vector<8x32xf32>
    %251 = arith.mulf %246, %248 : vector<8x32xf32>
    %252 = arith.addf %250, %251 : vector<8x32xf32>
    %253 = math.tanh %252 : vector<8x32xf32>
    %254 = arith.mulf %249, %253 : vector<8x32xf32>
    %255 = vector.extract_strided_slice %175 {offsets = [32, 0], sizes = [8, 128], strides = [1, 1]} : vector<64x128xf32> to vector<8x128xf32>
    %256 = arith.truncf %254 : vector<8x32xf32> to vector<8x32xbf16>
    %cst_53 = arith.constant dense<0.000000e+00> : vector<8x128xf32>
    %257 = tpu.matmul %256, %176, %cst_53 {dimension_numbers = #tpu.dot_dimension_numbers<[1], [0], [0], [1], [0, 0, 1, 1], [], []>} : vector<8x32xbf16>, vector<32x128xbf16>, vector<8x128xf32> -> vector<8x128xf32>
    %258 = arith.addf %255, %257 : vector<8x128xf32>
    %259 = arith.negf %258 : vector<8x128xf32>
    %260 = math.exp %259 : vector<8x128xf32>
    %cst_54 = arith.constant 1.000000e+00 : f32
    %261 = vector.broadcast %cst_54 : f32 to vector<8x128xf32>
    %262 = arith.addf %261, %260 : vector<8x128xf32>
    %263 = arith.divf %261, %262 : vector<8x128xf32>
    %264 = math.tanh %258 : vector<8x128xf32>
    %265 = vector.extract_strided_slice %263 {offsets = [0, 0], sizes = [8, 32], strides = [1, 1]} : vector<8x128xf32> to vector<8x32xf32>
    %266 = vector.extract_strided_slice %263 {offsets = [0, 32], sizes = [8, 32], strides = [1, 1]} : vector<8x128xf32> to vector<8x32xf32>
    %267 = vector.extract_strided_slice %264 {offsets = [0, 64], sizes = [8, 32], strides = [1, 1]} : vector<8x128xf32> to vector<8x32xf32>
    %268 = vector.extract_strided_slice %263 {offsets = [0, 96], sizes = [8, 32], strides = [1, 1]} : vector<8x128xf32> to vector<8x32xf32>
    %269 = arith.mulf %266, %252 : vector<8x32xf32>
    %270 = arith.mulf %265, %267 : vector<8x32xf32>
    %271 = arith.addf %269, %270 : vector<8x32xf32>
    %272 = math.tanh %271 : vector<8x32xf32>
    %273 = arith.mulf %268, %272 : vector<8x32xf32>
    %274 = vector.extract_strided_slice %175 {offsets = [40, 0], sizes = [8, 128], strides = [1, 1]} : vector<64x128xf32> to vector<8x128xf32>
    %275 = arith.truncf %273 : vector<8x32xf32> to vector<8x32xbf16>
    %cst_55 = arith.constant dense<0.000000e+00> : vector<8x128xf32>
    %276 = tpu.matmul %275, %176, %cst_55 {dimension_numbers = #tpu.dot_dimension_numbers<[1], [0], [0], [1], [0, 0, 1, 1], [], []>} : vector<8x32xbf16>, vector<32x128xbf16>, vector<8x128xf32> -> vector<8x128xf32>
    %277 = arith.addf %274, %276 : vector<8x128xf32>
    %278 = arith.negf %277 : vector<8x128xf32>
    %279 = math.exp %278 : vector<8x128xf32>
    %cst_56 = arith.constant 1.000000e+00 : f32
    %280 = vector.broadcast %cst_56 : f32 to vector<8x128xf32>
    %281 = arith.addf %280, %279 : vector<8x128xf32>
    %282 = arith.divf %280, %281 : vector<8x128xf32>
    %283 = math.tanh %277 : vector<8x128xf32>
    %284 = vector.extract_strided_slice %282 {offsets = [0, 0], sizes = [8, 32], strides = [1, 1]} : vector<8x128xf32> to vector<8x32xf32>
    %285 = vector.extract_strided_slice %282 {offsets = [0, 32], sizes = [8, 32], strides = [1, 1]} : vector<8x128xf32> to vector<8x32xf32>
    %286 = vector.extract_strided_slice %283 {offsets = [0, 64], sizes = [8, 32], strides = [1, 1]} : vector<8x128xf32> to vector<8x32xf32>
    %287 = vector.extract_strided_slice %282 {offsets = [0, 96], sizes = [8, 32], strides = [1, 1]} : vector<8x128xf32> to vector<8x32xf32>
    %288 = arith.mulf %285, %271 : vector<8x32xf32>
    %289 = arith.mulf %284, %286 : vector<8x32xf32>
    %290 = arith.addf %288, %289 : vector<8x32xf32>
    %291 = math.tanh %290 : vector<8x32xf32>
    %292 = arith.mulf %287, %291 : vector<8x32xf32>
    %293 = vector.extract_strided_slice %175 {offsets = [48, 0], sizes = [8, 128], strides = [1, 1]} : vector<64x128xf32> to vector<8x128xf32>
    %294 = arith.truncf %292 : vector<8x32xf32> to vector<8x32xbf16>
    %cst_57 = arith.constant dense<0.000000e+00> : vector<8x128xf32>
    %295 = tpu.matmul %294, %176, %cst_57 {dimension_numbers = #tpu.dot_dimension_numbers<[1], [0], [0], [1], [0, 0, 1, 1], [], []>} : vector<8x32xbf16>, vector<32x128xbf16>, vector<8x128xf32> -> vector<8x128xf32>
    %296 = arith.addf %293, %295 : vector<8x128xf32>
    %297 = arith.negf %296 : vector<8x128xf32>
    %298 = math.exp %297 : vector<8x128xf32>
    %cst_58 = arith.constant 1.000000e+00 : f32
    %299 = vector.broadcast %cst_58 : f32 to vector<8x128xf32>
    %300 = arith.addf %299, %298 : vector<8x128xf32>
    %301 = arith.divf %299, %300 : vector<8x128xf32>
    %302 = math.tanh %296 : vector<8x128xf32>
    %303 = vector.extract_strided_slice %301 {offsets = [0, 0], sizes = [8, 32], strides = [1, 1]} : vector<8x128xf32> to vector<8x32xf32>
    %304 = vector.extract_strided_slice %301 {offsets = [0, 32], sizes = [8, 32], strides = [1, 1]} : vector<8x128xf32> to vector<8x32xf32>
    %305 = vector.extract_strided_slice %302 {offsets = [0, 64], sizes = [8, 32], strides = [1, 1]} : vector<8x128xf32> to vector<8x32xf32>
    %306 = vector.extract_strided_slice %301 {offsets = [0, 96], sizes = [8, 32], strides = [1, 1]} : vector<8x128xf32> to vector<8x32xf32>
    %307 = arith.mulf %304, %290 : vector<8x32xf32>
    %308 = arith.mulf %303, %305 : vector<8x32xf32>
    %309 = arith.addf %307, %308 : vector<8x32xf32>
    %310 = math.tanh %309 : vector<8x32xf32>
    %311 = arith.mulf %306, %310 : vector<8x32xf32>
    %312 = vector.extract_strided_slice %175 {offsets = [56, 0], sizes = [8, 128], strides = [1, 1]} : vector<64x128xf32> to vector<8x128xf32>
    %313 = arith.truncf %311 : vector<8x32xf32> to vector<8x32xbf16>
    %cst_59 = arith.constant dense<0.000000e+00> : vector<8x128xf32>
    %314 = tpu.matmul %313, %176, %cst_59 {dimension_numbers = #tpu.dot_dimension_numbers<[1], [0], [0], [1], [0, 0, 1, 1], [], []>} : vector<8x32xbf16>, vector<32x128xbf16>, vector<8x128xf32> -> vector<8x128xf32>
    %315 = arith.addf %312, %314 : vector<8x128xf32>
    %316 = arith.negf %315 : vector<8x128xf32>
    %317 = math.exp %316 : vector<8x128xf32>
    %cst_60 = arith.constant 1.000000e+00 : f32
    %318 = vector.broadcast %cst_60 : f32 to vector<8x128xf32>
    %319 = arith.addf %318, %317 : vector<8x128xf32>
    %320 = arith.divf %318, %319 : vector<8x128xf32>
    %321 = math.tanh %315 : vector<8x128xf32>
    %322 = vector.extract_strided_slice %320 {offsets = [0, 0], sizes = [8, 32], strides = [1, 1]} : vector<8x128xf32> to vector<8x32xf32>
    %323 = vector.extract_strided_slice %320 {offsets = [0, 32], sizes = [8, 32], strides = [1, 1]} : vector<8x128xf32> to vector<8x32xf32>
    %324 = vector.extract_strided_slice %321 {offsets = [0, 64], sizes = [8, 32], strides = [1, 1]} : vector<8x128xf32> to vector<8x32xf32>
    %325 = vector.extract_strided_slice %320 {offsets = [0, 96], sizes = [8, 32], strides = [1, 1]} : vector<8x128xf32> to vector<8x32xf32>
    %326 = arith.mulf %323, %309 : vector<8x32xf32>
    %327 = arith.mulf %322, %324 : vector<8x32xf32>
    %328 = arith.addf %326, %327 : vector<8x32xf32>
    %329 = math.tanh %328 : vector<8x32xf32>
    %330 = arith.mulf %325, %329 : vector<8x32xf32>
    %331 = arith.truncf %330 : vector<8x32xf32> to vector<8x32xbf16>
    %c0_61 = arith.constant 0 : index
    %c0_62 = arith.constant 0 : index
    %332 = vector.load %arg7[%c0_61, %c0_62] : memref<32x128xbf16, #tpu.memory_space<vmem>>, vector<32x128xbf16>
    %cst_63 = arith.constant dense<0.000000e+00> : vector<8x128xf32>
    %333 = tpu.matmul %331, %332, %cst_63 {dimension_numbers = #tpu.dot_dimension_numbers<[1], [0], [0], [1], [0, 0, 1, 1], [], []>} : vector<8x32xbf16>, vector<32x128xbf16>, vector<8x128xf32> -> vector<8x128xf32>
    %c0_64 = arith.constant 0 : index
    %c0_65 = arith.constant 0 : index
    %334 = vector.load %arg8[%c0_64, %c0_65] : memref<1x128xf32, #tpu.memory_space<vmem>>, vector<1x128xf32>
    %335 = vector.broadcast %334 : vector<1x128xf32> to vector<8x128xf32>
    %336 = arith.addf %333, %335 : vector<8x128xf32>
    %cst_66 = arith.constant 0.000000e+00 : f32
    %337 = vector.broadcast %cst_66 : f32 to vector<8x128xf32>
    %338 = arith.maximumf %336, %337 : vector<8x128xf32>
    %339 = arith.truncf %338 : vector<8x128xf32> to vector<8x128xbf16>
    %c0_67 = arith.constant 0 : index
    %c0_68 = arith.constant 0 : index
    %340 = vector.load %arg9[%c0_67, %c0_68] : memref<128x4xbf16, #tpu.memory_space<vmem>>, vector<128x4xbf16>
    %cst_69 = arith.constant dense<0.000000e+00> : vector<8x4xf32>
    %341 = tpu.matmul %339, %340, %cst_69 {dimension_numbers = #tpu.dot_dimension_numbers<[1], [0], [0], [1], [0, 0, 1, 1], [], []>} : vector<8x128xbf16>, vector<128x4xbf16>, vector<8x4xf32> -> vector<8x4xf32>
    %c0_70 = arith.constant 0 : index
    %c0_71 = arith.constant 0 : index
    %342 = vector.load %arg10[%c0_70, %c0_71] : memref<1x4xf32, #tpu.memory_space<vmem>>, vector<1x4xf32>
    %343 = vector.broadcast %342 : vector<1x4xf32> to vector<8x4xf32>
    %344 = arith.addf %341, %343 : vector<8x4xf32>
    %cst_72 = arith.constant dense<0xFF800000> : vector<8xf32>
    %345 = vector.multi_reduction <maximumf>, %344, %cst_72 [1] : vector<8x4xf32> to vector<8xf32>
    %346 = vector.shape_cast %345 : vector<8xf32> to vector<8x1xf32>
    %347 = vector.broadcast %346 : vector<8x1xf32> to vector<8x4xf32>
    %348 = arith.subf %344, %347 : vector<8x4xf32>
    %349 = math.exp %348 : vector<8x4xf32>
    %cst_73 = arith.constant dense<0.000000e+00> : vector<8xf32>
    %350 = vector.multi_reduction <add>, %349, %cst_73 [1] : vector<8x4xf32> to vector<8xf32>
    %351 = vector.shape_cast %350 : vector<8xf32> to vector<8x1xf32>
    %352 = vector.broadcast %351 : vector<8x1xf32> to vector<8x4xf32>
    %353 = arith.divf %349, %352 : vector<8x4xf32>
    %c0_74 = arith.constant 0 : index
    %c0_75 = arith.constant 0 : index
    %354 = vector.load %arg11[%c0_74, %c0_75] : memref<8x4xf32, #tpu.memory_space<vmem>>, vector<8x4xf32>
    tpu.vector_store %arg11[%c0_74, %c0_75], %353 {strides = array<i32>} : memref<8x4xf32, #tpu.memory_space<vmem>>, vector<8x4xf32>,
    return
  }
}

</mosaic_0001>

<bundles_post_ra>
// kernel: lstm_classifier_forward.1
= control target key start
LH: loop header
LB: loop body
LE: loop exit
PB: predicated region body
PF: predicated region fallthrough
CT: control target
= control target key end

     0   :  { %vm82_vm0 = vcmask 130048   ;;  %v2157_v1 = vmov 0.0   ;;  %vm2158_vm1 = vmmov 0   ;;  %v2159_v8 = vmov 0   ;;  %s2161_s30 = smov 32   ;;  %s2613_s1 = inlined_call_operand.vmem [shape: bf16[16,128], index: 1, kind: input, shape index: {}]   ;;  %s2614_s0 = inlined_call_operand.vmem [shape: bf16[64,16], index: 0, kind: input, shape index: {}]   ;;  %s2615_s2 = inlined_call_operand.vmem [shape: bf16[32,128], index: 2, kind: input, shape index: {}]   ;;  %s2616_s3 = inlined_call_operand.vmem [shape: f32[1,128], index: 3, kind: input, shape index: {}]   ;;  %s2617_s4 = inlined_call_operand.vmem [shape: bf16[32,128], index: 4, kind: input, shape index: {}]   ;;  %s2618_s5 = inlined_call_operand.vmem [shape: bf16[32,128], index: 5, kind: input, shape index: {}]   ;;  %s2619_s6 = inlined_call_operand.vmem [shape: f32[1,128], index: 6, kind: input, shape index: {}]   ;;  %s2620_s7 = inlined_call_operand.vmem [shape: bf16[32,128], index: 7, kind: input, shape index: {}]   ;;  %s2621_s9 = inlined_call_operand.vmem [shape: bf16[128,4], index: 9, kind: input, shape index: {}]   ;;  %s2622_s8 = inlined_call_operand.vmem [shape: f32[1,128], index: 8, kind: input, shape index: {}]   ;;  %s2623_s10 = inlined_call_operand.vmem [shape: f32[1,4], index: 10, kind: input, shape index: {}]   ;;  %s2624_s11 = inlined_call_operand.vmem [shape: f32[8,4], index: 11, kind: output, shape index: {}]  }
   0x1   :  { %v2004_v0 = vld [vmem:[%s2613_s1] sm:$0xff]   ;;  %1855 = vmatprep.subr.bf16.mxu1 %v2157_v1  ;;  %1859 = vmatprep.mubr.msk.bf16.mxu1 %vm2158_vm1, %v2157_v1  ;;  %v2006_v3 = vld [vmem:[%s2614_s0 + $0x8] sm:$0xff]   ;;  %v2008_v5 = vld [vmem:[%s2614_s0 + $0x10] sm:$0xff]   ;;  %vm176_vm2 = vcmask 261120   ;;  %vm1669_vm3 = vcmask 31744  }
   0x2   :  { %v2005_v2 = vld [vmem:[%s2614_s0] sm:$0xff]   ;;  %1821 = vmatprep.subr.bf16.mxu0 %v2004_v0  ;;  %v2252_v6 = vld [vmem:[%s2615_s2 + $0x8] sm:$0xff]   ;;  %v2009_v7 = vld [vmem:[%s2614_s0 + $0x18] sm:$0xff]  }
   0x3   :  { %1822 = vmatpush3.bf16.msra.mxu0 %v2004_v0  ;;  %1823 = vmatprep.mubr.msk.bf16.mxu0 %vm82_vm0, %v2005_v2  ;;  %v2238_v4 = vld [vmem:[%s2615_s2] sm:$0xff]  }
   0x4   :  { %1831 = vmatprep.subr.bf16.mxu0 %v2157_v1  ;;  %1856 = vmatpush3.bf16.msra.mxu1 %v2238_v4  ;;  %v1686_v9 = vld [vmem:[%s2616_s3] ss:$0 sm:$0xff]  ;;  %s2160_s3 = smov 64  }
   0x5   :  { %1857 = vmatprep.subr.bf16.mxu1 %v2157_v1 }
   0x6   :  { %1824 = vmatmul.mubr.msk.bf16.vlgmr.msra.gmra.mrb[0].mxu0 %vm82_vm0, %v2006_v3 }
   0x7   :  { %1832 = vmatpush3.bf16.msra.mxu0 %v2238_v4  ;;  %1827 = vmatprep.mubr.msk.bf16.mxu0 %vm82_vm0, %v2008_v5 }
   0x8   :  { %1833 = vmatprep.subr.bf16.mxu0 %v2157_v1  ;;  %1858 = vmatpush3.bf16.msra.mxu1 %v2252_v6 }
   0x9   :  { %1871 = vmatprep.subr.bf16.mxu1 %v2157_v1 }
   0xb   :  { %1834 = vmatpush3.bf16.msra.mxu0 %v2252_v6 }
   0xc   :  { %1839 = vmatprep.subr.bf16.mxu0 %v2157_v1 }
   0xe   :  { %1828 = vmatmul.mubr.msk.bf16.gmra.mrb[4].mxu0 %vm82_vm0, %v2009_v7 }
   0xf   :  { %1835 = vmatprep.mubr.msk.bf16.mxu0 %vm2158_vm1, %v2157_v1 }
  0x16   :  { %1836 = vmatmul.mubr.bf16.vlgmr.msra.gmra.mrb[8].mxu0 %v2159_v8 }
  0x17   :  { %1840 = vmatpush3.bf16.msra.mxu0 %v2238_v4  ;;  %1843 = vmatprep.mubr.msk.bf16.mxu0 %vm2158_vm1, %v2157_v1 }
  0x18   :  { %1841 = vmatprep.subr.bf16.mxu0 %v2157_v1 }
  0x1b   :  { %1842 = vmatpush3.bf16.msra.mxu0 %v2252_v6 }
  0x1c   :  { %1847 = vmatprep.subr.bf16.mxu0 %v2157_v1 }
  0xd9   :  { %v1825_v10 = vpop.f32.mrb[0].mxu0 }
  0xda   :  { %v2275_v11 = vadd.f32 %v1825_v10, %v1686_v9  ;;  %v129_v12 = vpop.f32.mrb[1].mxu0 }
  0xdb   :  { %v1826_v13 = vpop.f32.mrb[2].mxu0  ;;  %v130_v25 = vadd.f32 %v1686_v9, %v129_v12 }
  0xdc   :  { %v2277_v14 = vadd.f32 %v1826_v13, %v1686_v9  ;;  %v132_v15 = vpop.f32.mrb[3].mxu0 }
  0xdd   :  { %v133_v16 = vadd.f32 %v1686_v9, %v132_v15 }
  0xe1   :  { %v1829_v17 = vpop.f32.mrb[4].mxu0 }
  0xe2   :  { %v2279_v18 = vadd.f32 %v1829_v17, %v1686_v9  ;;  %v145_v19 = vpop.f32.mrb[5].mxu0 }
  0xe3   :  { %v2281_v20 = vadd.f32 %v1686_v9, %v145_v19  ;;  %v1830_v21 = vpop.f32.mrb[6].mxu0 }
  0xe4   :  { %v2283_v22 = vadd.f32 %v1830_v21, %v1686_v9  ;;  %v148_v23 = vpop.f32.mrb[7].mxu0 }
  0xe5   :  { %v2285_v24 = vadd.f32 %v1686_v9, %v148_v23 }
  0xe9   :  { %v214_v26 = vpop.f32.mrb[8].mxu0 }
  0xea   :  { %v220_v27 = vadd.f32 %v214_v26, %v130_v25  ;;  %v1837_v28 = vpop.f32.mrb[9].mxu0 }
  0xeb   :  { %v217_v29 = vpop.f32.mrb[10].mxu0 }
  0xec   :  { %2025 = vtanh.f32 %v220_v27  ;;  %v1838_v30 = vpop.f32.mrb[11].mxu0  ;;  %v1698_v32 = vmul.f32 -1.442695, %v220_v27 }
  0xee   :  { %2027 = vpow2.f32 %v1698_v32 }
  0xf6   :  { %v2026_v31 = vpop.eup %2025 }
  0xf7   :  { %230 = vrot.lane.b32.xlu0 %v2026_v31, %s2160_s3 }
  0xf8   :  { %v2028_v33 = vpop.eup %2027 }
  0xf9   :  { %v224_v34 = vadd.f32 1.0, %v2028_v33 }
  0xfb   :  { %2029 = vrcp.f32 %v224_v34 }
 0x105   :  { %v2030_v35 = vpop.eup %2029 }
 0x106   :  { %v228_v38 = vmul.f32 0.0, %v2030_v35 }
 0x169   :  { %v231_v36 = vpop.permute.xlu0 %230 }
 0x16a   :  { %v233_v37 = vmul.f32 %v2030_v35, %v231_v36 }
 0x16c   :  { %235 = vrot.lane.b32.xlu0 %v233_v37, %s2161_s30 }
 0x1de   :  { %v236_v39 = vpop.permute.xlu0 %235 }
 0x1df   :  { %v238_v40 = vadd.f32 %v236_v39, %v228_v38 }
 0x1e1   :  { %2031 = vtanh.f32 %v238_v40 }
 0x1eb   :  { %v2032_v41 = vpop.eup %2031 }
 0x1ec   :  { %241 = vrot.lane.b32.xlu1 %v2032_v41, %s2160_s3 }
 0x25e   :  { %v242_v42 = vpop.permute.xlu1 %241 }
 0x25f   :  { %v2290_v43 = vmul.f32 %v2030_v35, %v242_v42 }
 0x261   :  { %v250_v44 = vpack.c.bf16 %v2290_v43, %v2290_v43 }
 0x263   :  { %252 = vrot.lane.b32.xlu1 %v250_v44, %s2161_s30 }
 0x2d5   :  { %v253_v45 = vpop.permute.xlu1 %252 }
 0x2d6   :  { %1844 = vmatmul.mubr.msk.bf16.vlgmr.msra.gmra.mrb[12].mxu0 %vm176_vm2, %v253_v45 }
 0x2d7   :  { %1848 = vmatpush3.bf16.msra.mxu0 %v2238_v4  ;;  %1851 = vmatprep.mubr.msk.bf16.mxu0 %vm2158_vm1, %v2157_v1 }
 0x2d8   :  { %1849 = vmatprep.subr.bf16.mxu0 %v2157_v1 }
 0x2db   :  { %1850 = vmatpush3.bf16.msra.mxu0 %v2252_v6 }
 0x2dc   :  { %1863 = vmatprep.subr.bf16.mxu0 %v2157_v1 }
 0x3a9   :  { %v291_v46 = vpop.f32.mrb[12].mxu0 }
 0x3aa   :  { %v297_v47 = vadd.f32 %v291_v46, %v133_v16  ;;  %v1845_v48 = vpop.f32.mrb[13].mxu0 }
 0x3ab   :  { %v294_v49 = vpop.f32.mrb[14].mxu0 }
 0x3ac   :  { %2033 = vtanh.f32 %v297_v47  ;;  %v1846_v50 = vpop.f32.mrb[15].mxu0  ;;  %v1700_v52 = vmul.f32 -1.442695, %v297_v47 }
 0x3ae   :  { %2035 = vpow2.f32 %v1700_v52 }
 0x3b6   :  { %v2034_v51 = vpop.eup %2033 }
 0x3b7   :  { %307 = vrot.lane.b32.xlu0 %v2034_v51, %s2160_s3 }
 0x3b8   :  { %v2036_v53 = vpop.eup %2035 }
 0x3b9   :  { %v301_v54 = vadd.f32 1.0, %v2036_v53 }
 0x3bb   :  { %2037 = vrcp.f32 %v301_v54 }
 0x3c5   :  { %v2038_v55 = vpop.eup %2037 }
 0x3c6   :  { %v305_v58 = vmul.f32 %v2038_v55, %v238_v40 }
 0x429   :  { %v308_v56 = vpop.permute.xlu0 %307 }
 0x42a   :  { %v310_v57 = vmul.f32 %v2038_v55, %v308_v56 }
 0x42c   :  { %312 = vrot.lane.b32.xlu1 %v310_v57, %s2161_s30 }
 0x49e   :  { %v313_v59 = vpop.permute.xlu1 %312 }
 0x49f   :  { %v315_v60 = vadd.f32 %v313_v59, %v305_v58 }
 0x4a1   :  { %2039 = vtanh.f32 %v315_v60 }
 0x4ab   :  { %v2040_v61 = vpop.eup %2039 }
 0x4ac   :  { %318 = vrot.lane.b32.xlu0 %v2040_v61, %s2160_s3 }
 0x51e   :  { %v319_v62 = vpop.permute.xlu0 %318 }
 0x51f   :  { %v2305_v63 = vmul.f32 %v2038_v55, %v319_v62 }
 0x521   :  { %v327_v0 = vpack.c.bf16 %v2305_v63, %v2305_v63 }
 0x523   :  { %329 = vrot.lane.b32.xlu1 %v327_v0, %s2161_s30 }
 0x595   :  { %v330_v2 = vpop.permute.xlu1 %329 }
 0x596   :  { %1852 = vmatmul.mubr.msk.bf16.vlgmr.msra.gmra.mrb[16].mxu0 %vm176_vm2, %v330_v2 }
 0x597   :  { %1864 = vmatpush3.bf16.msra.mxu0 %v2238_v4  ;;  %1867 = vmatprep.mubr.msk.bf16.mxu0 %vm2158_vm1, %v2157_v1 }
 0x598   :  { %1865 = vmatprep.subr.bf16.mxu0 %v2157_v1 }
 0x59b   :  { %1866 = vmatpush3.bf16.msra.mxu0 %v2252_v6 }
 0x59c   :  { %1879 = vmatprep.subr.bf16.mxu0 %v2157_v1 }
 0x669   :  { %v368_v3 = vpop.f32.mrb[16].mxu0 }
 0x66a   :  { %v374_v5 = vadd.f32 %v368_v3, %v2275_v11  ;;  %v1853_v7 = vpop.f32.mrb[17].mxu0 }
 0x66b   :  { %v371_v9 = vpop.f32.mrb[18].mxu0 }
 0x66c   :  { %2041 = vtanh.f32 %v374_v5  ;;  %v1854_v10 = vpop.f32.mrb[19].mxu0  ;;  %v1702_v13 = vmul.f32 -1.442695, %v374_v5 }
 0x66e   :  { %2043 = vpow2.f32 %v1702_v13 }
 0x676   :  { %v2042_v12 = vpop.eup %2041 }
 0x677   :  { %384 = vrot.lane.b32.xlu0 %v2042_v12, %s2160_s3 }
 0x678   :  { %v2044_v15 = vpop.eup %2043 }
 0x679   :  { %v378_v16 = vadd.f32 1.0, %v2044_v15 }
 0x67b   :  { %2045 = vrcp.f32 %v378_v16 }
 0x685   :  { %v2046_v17 = vpop.eup %2045 }
 0x686   :  { %v382_v23 = vmul.f32 %v2046_v17, %v315_v60 }
 0x6e9   :  { %v385_v19 = vpop.permute.xlu0 %384 }
 0x6ea   :  { %v387_v21 = vmul.f32 %v2046_v17, %v385_v19 }
 0x6ec   :  { %389 = vrot.lane.b32.xlu1 %v387_v21, %s2161_s30 }
 0x75e   :  { %v390_v25 = vpop.permute.xlu1 %389 }
 0x75f   :  { %v392_v11 = vadd.f32 %v390_v25, %v382_v23 }
 0x761   :  { %2047 = vtanh.f32 %v392_v11 }
 0x76b   :  { %v2048_v26 = vpop.eup %2047 }
 0x76c   :  { %395 = vrot.lane.b32.xlu0 %v2048_v26, %s2160_s3 }
 0x7de   :  { %v396_v27 = vpop.permute.xlu0 %395 }
 0x7df   :  { %v2321_v28 = vmul.f32 %v2046_v17, %v396_v27 }
 0x7e1   :  { %v404_v29 = vpack.c.bf16 %v2321_v28, %v2321_v28 }
 0x7e3   :  { %406 = vrot.lane.b32.xlu1 %v404_v29, %s2161_s30 }
 0x855   :  { %v407_v30 = vpop.permute.xlu1 %406 }
 0x856   :  { %1860 = vmatmul.mubr.msk.bf16.vlgmr.msra.gmra.mrb[0].mxu1 %vm176_vm2, %v407_v30 }
 0x857   :  { %1872 = vmatpush3.bf16.msra.mxu1 %v2238_v4  ;;  %1875 = vmatprep.mubr.msk.bf16.mxu1 %vm2158_vm1, %v2157_v1 }
 0x858   :  { %1873 = vmatprep.subr.bf16.mxu1 %v2157_v1 }
 0x85b   :  { %1874 = vmatpush3.bf16.msra.mxu1 %v2252_v6 }
 0x85c   :  { %1887 = vmatprep.subr.bf16.mxu1 %v2157_v1 }
 0x929   :  { %v445_v31 = vpop.f32.mrb[0].mxu1 }
 0x92a   :  { %v451_v32 = vadd.f32 %v445_v31, %v2277_v14  ;;  %v1861_v33 = vpop.f32.mrb[1].mxu1 }
 0x92b   :  { %v448_v34 = vpop.f32.mrb[2].mxu1 }
 0x92c   :  { %2049 = vtanh.f32 %v451_v32  ;;  %v1862_v35 = vpop.f32.mrb[3].mxu1  ;;  %v1704_v37 = vmul.f32 -1.442695, %v451_v32 }
 0x92e   :  { %2051 = vpow2.f32 %v1704_v37 }
 0x936   :  { %v2050_v36 = vpop.eup %2049 }
 0x937   :  { %461 = vrot.lane.b32.xlu0 %v2050_v36, %s2160_s3 }
 0x938   :  { %v2052_v38 = vpop.eup %2051 }
 0x939   :  { %v455_v39 = vadd.f32 1.0, %v2052_v38 }
 0x93b   :  { %2053 = vrcp.f32 %v455_v39 }
 0x945   :  { %v2054_v40 = vpop.eup %2053 }
 0x946   :  { %v459_v44 = vmul.f32 %v2054_v40, %v392_v11 }
 0x9a9   :  { %v462_v41 = vpop.permute.xlu0 %461 }
 0x9aa   :  { %v464_v42 = vmul.f32 %v2054_v40, %v462_v41 }
 0x9ac   :  { %466 = vrot.lane.b32.xlu1 %v464_v42, %s2161_s30 }
 0xa1e   :  { %v467_v45 = vpop.permute.xlu1 %466 }
 0xa1f   :  { %v469_v14 = vadd.f32 %v467_v45, %v459_v44 }
 0xa21   :  { %2055 = vtanh.f32 %v469_v14 }
 0xa2b   :  { %v2056_v46 = vpop.eup %2055 }
 0xa2c   :  { %472 = vrot.lane.b32.xlu0 %v2056_v46, %s2160_s3 }
 0xa9e   :  { %v473_v47 = vpop.permute.xlu0 %472 }
 0xa9f   :  { %v2337_v48 = vmul.f32 %v2054_v40, %v473_v47 }
 0xaa1   :  { %v481_v49 = vpack.c.bf16 %v2337_v48, %v2337_v48 }
 0xaa3   :  { %483 = vrot.lane.b32.xlu1 %v481_v49, %s2161_s30 }
 0xb15   :  { %v484_v50 = vpop.permute.xlu1 %483 }
 0xb16   :  { %1868 = vmatmul.mubr.msk.bf16.vlgmr.msra.gmra.mrb[20].mxu0 %vm176_vm2, %v484_v50 }
 0xb17   :  { %1880 = vmatpush3.bf16.msra.mxu0 %v2238_v4  ;;  %1883 = vmatprep.mubr.msk.bf16.mxu0 %vm2158_vm1, %v2157_v1 }
 0xb18   :  { %1881 = vmatprep.subr.bf16.mxu0 %v2157_v1 }
 0xb1b   :  { %1882 = vmatpush3.bf16.msra.mxu0 %v2252_v6 }
 0xbe9   :  { %v522_v51 = vpop.f32.mrb[20].mxu0 }
 0xbea   :  { %v528_v52 = vadd.f32 %v522_v51, %v2281_v20  ;;  %v1869_v53 = vpop.f32.mrb[21].mxu0  ;;  %v2011_v51 = vld [vmem:[%s2617_s4] sm:$0xff]  }
 0xbeb   :  { %v525_v54 = vpop.f32.mrb[22].mxu0  ;;  %1895 = vmatprep.subr.bf16.mxu0 %v2011_v51 }
 0xbec   :  { %2057 = vtanh.f32 %v528_v52  ;;  %v1870_v55 = vpop.f32.mrb[23].mxu0  ;;  %v1706_v57 = vmul.f32 -1.442695, %v528_v52 }
 0xbee   :  { %2059 = vpow2.f32 %v1706_v57 }
 0xbf6   :  { %v2058_v56 = vpop.eup %2057 }
 0xbf7   :  { %538 = vrot.lane.b32.xlu0 %v2058_v56, %s2160_s3 }
 0xbf8   :  { %v2060_v58 = vpop.eup %2059 }
 0xbf9   :  { %v532_v59 = vadd.f32 1.0, %v2060_v58 }
 0xbfb   :  { %2061 = vrcp.f32 %v532_v59 }
 0xc05   :  { %v2062_v60 = vpop.eup %2061 }
 0xc06   :  { %v536_v0 = vmul.f32 %v2062_v60, %v469_v14 }
 0xc69   :  { %v539_v61 = vpop.permute.xlu0 %538 }
 0xc6a   :  { %v541_v62 = vmul.f32 %v2062_v60, %v539_v61  ;;  %v2409_v61 = vld [vmem:[%s2618_s5] sm:$0xff]  }
 0xc6c   :  { %543 = vrot.lane.b32.xlu1 %v541_v62, %s2161_s30  ;;  %v2417_v62 = vld [vmem:[%s2618_s5 + $0x8] sm:$0xff]  }
 0xcde   :  { %v544_v2 = vpop.permute.xlu1 %543 }
 0xcdf   :  { %v546_v20 = vadd.f32 %v544_v2, %v536_v0 }
 0xce1   :  { %2063 = vtanh.f32 %v546_v20 }
 0xceb   :  { %v2064_v3 = vpop.eup %2063 }
 0xcec   :  { %549 = vrot.lane.b32.xlu0 %v2064_v3, %s2160_s3 }
 0xd5e   :  { %v550_v5 = vpop.permute.xlu0 %549 }
 0xd5f   :  { %v2352_v7 = vmul.f32 %v2062_v60, %v550_v5 }
 0xd61   :  { %v558_v9 = vpack.c.bf16 %v2352_v7, %v2352_v7 }
 0xd63   :  { %560 = vrot.lane.b32.xlu1 %v558_v9, %s2161_s30 }
 0xdd5   :  { %v561_v10 = vpop.permute.xlu1 %560 }
 0xdd6   :  { %1876 = vmatmul.mubr.msk.bf16.vlgmr.msra.gmra.mrb[4].mxu1 %vm176_vm2, %v561_v10 }
 0xdd7   :  { %1888 = vmatpush3.bf16.msra.mxu1 %v2238_v4  ;;  %1891 = vmatprep.mubr.msk.bf16.mxu1 %vm2158_vm1, %v2157_v1 }
 0xdd8   :  { %1889 = vmatprep.subr.bf16.mxu1 %v2157_v1 }
 0xddb   :  { %1890 = vmatpush3.bf16.msra.mxu1 %v2252_v6 }
 0xddc   :  { %1907 = vmatprep.subr.bf16.mxu1 %v2157_v1 }
 0xea9   :  { %v599_v12 = vpop.f32.mrb[4].mxu1 }
 0xeaa   :  { %v605_v13 = vadd.f32 %v599_v12, %v2285_v24  ;;  %v1877_v15 = vpop.f32.mrb[5].mxu1 }
 0xeab   :  { %v602_v16 = vpop.f32.mrb[6].mxu1  ;;  %v2445_v15 = vld [vmem:[%s2619_s6] ss:$0 sm:$0xff] }
 0xeac   :  { %2065 = vtanh.f32 %v605_v13  ;;  %v1878_v17 = vpop.f32.mrb[7].mxu1  ;;  %v1708_v4 = vmul.f32 -1.442695, %v605_v13 }
 0xeae   :  { %2067 = vpow2.f32 %v1708_v4 }
 0xeb6   :  { %v2066_v19 = vpop.eup %2065 }
 0xeb7   :  { %615 = vrot.lane.b32.xlu0 %v2066_v19, %s2160_s3 }
 0xeb8   :  { %v2068_v21 = vpop.eup %2067 }
 0xeb9   :  { %v609_v23 = vadd.f32 1.0, %v2068_v21 }
 0xebb   :  { %2069 = vrcp.f32 %v609_v23 }
 0xec5   :  { %v2070_v25 = vpop.eup %2069 }
 0xec6   :  { %v613_v26 = vmul.f32 %v2070_v25, %v546_v20 }
 0xf29   :  { %v616_v11 = vpop.permute.xlu0 %615 }
 0xf2a   :  { %v618_v6 = vmul.f32 %v2070_v25, %v616_v11 }
 0xf2c   :  { %620 = vrot.lane.b32.xlu1 %v618_v6, %s2161_s30 }
 0xf9e   :  { %v621_v27 = vpop.permute.xlu1 %620 }
 0xf9f   :  { %v623_v24 = vadd.f32 %v621_v27, %v613_v26 }
 0xfa1   :  { %2071 = vtanh.f32 %v623_v24 }
 0xfab   :  { %v2072_v29 = vpop.eup %2071 }
 0xfac   :  { %626 = vrot.lane.b32.xlu0 %v2072_v29, %s2160_s3 }
0x101e   :  { %v627_v30 = vpop.permute.xlu0 %626 }
0x101f   :  { %v2368_v31 = vmul.f32 %v2070_v25, %v627_v30 }
0x1021   :  { %v635_v32 = vpack.c.bf16 %v2368_v31, %v2368_v31 }
0x1023   :  { %637 = vrot.lane.b32.xlu1 %v635_v32, %s2161_s30 }
0x1095   :  { %v638_v33 = vpop.permute.xlu1 %637 }
0x1096   :  { %1884 = vmatmul.mubr.msk.bf16.vlgmr.msra.gmra.mrb[24].mxu0 %vm176_vm2, %v638_v33 }
0x1097   :  { %1896 = vmatpush3.bf16.msra.mxu0 %v2011_v51 }
0x1169   :  { %v676_v34 = vpop.f32.mrb[24].mxu0 }
0x116a   :  { %v682_v35 = vadd.f32 %v676_v34, %v2279_v18  ;;  %v1885_v36 = vpop.f32.mrb[25].mxu0 }
0x116b   :  { %v679_v37 = vpop.f32.mrb[26].mxu0 }
0x116c   :  { %2073 = vtanh.f32 %v682_v35  ;;  %v1886_v38 = vpop.f32.mrb[27].mxu0  ;;  %v1710_v40 = vmul.f32 -1.442695, %v682_v35 }
0x116e   :  { %2075 = vpow2.f32 %v1710_v40 }
0x1176   :  { %v2074_v39 = vpop.eup %2073 }
0x1177   :  { %692 = vrot.lane.b32.xlu0 %v2074_v39, %s2160_s3 }
0x1178   :  { %v2076_v41 = vpop.eup %2075 }
0x1179   :  { %v686_v42 = vadd.f32 1.0, %v2076_v41 }
0x117b   :  { %2077 = vrcp.f32 %v686_v42 }
0x1185   :  { %v2078_v44 = vpop.eup %2077 }
0x1186   :  { %v690_v18 = vmul.f32 %v2078_v44, %v623_v24 }
0x11e9   :  { %v693_v45 = vpop.permute.xlu0 %692 }
0x11ea   :  { %v695_v14 = vmul.f32 %v2078_v44, %v693_v45 }
0x11ec   :  { %697 = vrot.lane.b32.xlu1 %v695_v14, %s2161_s30 }
0x11f0   :  { %246 = vrot.lane.b32.xlu1 %v2290_v43, %s2161_s30  ;;  %v2012_v43 = vld [vmem:[%s2617_s4 + $0x8] sm:$0xff]  }
0x11f1   :  { %1897 = vmatprep.subr.bf16.mxu0 %v2012_v43 }
0x11f2   :  { %1898 = vmatpush3.bf16.msra.mxu0 %v2012_v43 }
0x11f3   :  { %1923 = vmatprep.subr.bf16.mxu0 %v2157_v1 }
0x11f4   :  { %400 = vrot.lane.b32.xlu1 %v2321_v28, %s2161_s30 }
0x125e   :  { %v698_v46 = vpop.permute.xlu1 %697 }
0x125f   :  { %v2381_v47 = vadd.f32 %v698_v46, %v690_v18 }
0x1261   :  { %2079 = vtanh.f32 %v2381_v47 }
0x1262   :  { %v247_v49 = vpop.permute.xlu1 %246 }
0x1263   :  { %249 = vst.msk [vmem:[#allocation2] sm:$0xff] %vm176_vm2, %v247_v49 }
0x1266   :  { %v401_v50 = vpop.permute.xlu1 %400 }
0x1267   :  { %403 = vst.msk [vmem:[#allocation2 + $0x10] sm:$0xff] %vm176_vm2, %v401_v50 }
0x126a   :  { %v789_v57 = vld [vmem:[#allocation2] sm:$0xff] }
0x126b   :  { %v2080_v28 = vpop.eup %2079 }
0x126c   :  { %703 = vrot.lane.b32.xlu0 %v2080_v28, %s2160_s3 }
0x1270   :  { %323 = vrot.lane.b32.xlu0 %v2305_v63, %s2161_s30 }
0x1274   :  { %477 = vrot.lane.b32.xlu0 %v2337_v48, %s2161_s30  ;;  %v791_v48 = vld [vmem:[#allocation2 + $0x10] sm:$0xff] }
0x12de   :  { %v704_v52 = vpop.permute.xlu0 %703 }
0x12df   :  { %v2398_v53 = vmul.f32 %v2078_v44, %v704_v52 }
0x12e1   :  { %v712_v54 = vpack.c.bf16 %v2398_v53, %v2398_v53 }
0x12e2   :  { %v324_v55 = vpop.permute.xlu0 %323 }
0x12e3   :  { %326 = vst.msk [vmem:[#allocation2 + $0x8] sm:$0xff] %vm176_vm2, %v324_v55  ;;  %714 = vrot.lane.b32.xlu1 %v712_v54, %s2161_s30 }
0x12e6   :  { %v478_v56 = vpop.permute.xlu0 %477 }
0x12e7   :  { %480 = vst.msk [vmem:[#allocation2 + $0x18] sm:$0xff] %vm176_vm2, %v478_v56 }
0x12ea   :  { %v790_v58 = vld [vmem:[#allocation2 + $0x8] sm:$0xff] }
0x12eb   :  { %v797_v63 = vpack.c.bf16 %v790_v58, %v789_v57 }
0x12ed   :  { %1899 = vmatprep.mubr.msk.bf16.mxu0 %vm176_vm2, %v797_v63 }
0x12ee   :  { %v792_v59 = vld [vmem:[#allocation2 + $0x18] sm:$0xff] }
0x12ef   :  { %v798_v60 = vpack.c.bf16 %v792_v59, %v791_v48 }
0x12f1   :  { %1900 = vmatmul.mubr.msk.bf16.vlgmr.msra.gmra.mrb[28].mxu0 %vm176_vm2, %v798_v60 }
0x12f2   :  { %1924 = vmatpush3.bf16.msra.mxu0 %v2409_v61 }
0x12f3   :  { %1925 = vmatprep.subr.bf16.mxu0 %v2157_v1 }
0x12f6   :  { %1926 = vmatpush3.bf16.msra.mxu0 %v2417_v62 }
0x12f7   :  { %1939 = vmatprep.subr.bf16.mxu0 %v2157_v1 }
0x1355   :  { %v715_v0 = vpop.permute.xlu1 %714 }
0x1356   :  { %1892 = vmatmul.mubr.msk.bf16.vlgmr.msra.gmra.mrb[8].mxu1 %vm176_vm2, %v715_v0 }
0x1357   :  { %1908 = vmatpush3.bf16.msra.mxu1 %v2409_v61  ;;  %1911 = vmatprep.mubr.msk.bf16.mxu1 %vm2158_vm1, %v2157_v1 }
0x1358   :  { %1909 = vmatprep.subr.bf16.mxu1 %v2157_v1 }
0x135b   :  { %1910 = vmatpush3.bf16.msra.mxu1 %v2417_v62 }
0x135c   :  { %1915 = vmatprep.subr.bf16.mxu1 %v2157_v1 }
0x135e   :  { %1912 = vmatmul.mubr.bf16.vlgmr.msra.gmra.mrb[12].mxu1 %v2159_v8 }
0x135f   :  { %1916 = vmatpush3.bf16.msra.mxu1 %v2409_v61  ;;  %1919 = vmatprep.mubr.msk.bf16.mxu1 %vm2158_vm1, %v2157_v1 }
0x1360   :  { %1917 = vmatprep.subr.bf16.mxu1 %v2157_v1 }
0x1363   :  { %1918 = vmatpush3.bf16.msra.mxu1 %v2417_v62 }
0x1364   :  { %1931 = vmatprep.subr.bf16.mxu1 %v2157_v1 }
0x13c4   :  { %v2435_v2 = vpop.f32.mrb[28].mxu0 }
0x13c5   :  { %v870_v20 = vpop.f32.mrb[29].mxu0 }
0x13c6   :  { %v2437_v3 = vpop.f32.mrb[30].mxu0  ;;  %v871_v16 = vadd.f32 %v2445_v15, %v870_v20 }
0x13c7   :  { %v2439_v5 = vpop.f32.mrb[31].mxu0 }
0x13c8   :  { %v874_v43 = vadd.f32 %v2445_v15, %v2439_v5 }
0x1429   :  { %v753_v9 = vpop.f32.mrb[8].mxu1 }
0x142a   :  { %v759_v8 = vadd.f32 %v753_v9, %v2283_v22  ;;  %v1893_v10 = vpop.f32.mrb[9].mxu1 }
0x142b   :  { %v756_v12 = vpop.f32.mrb[10].mxu1 }
0x142c   :  { %v1894_v13 = vpop.f32.mrb[11].mxu1  ;;  %v1712_v35 = vmul.f32 -1.442695, %v759_v8 }
0x1431   :  { %v951_v17 = vpop.f32.mrb[12].mxu1 }
0x1432   :  { %v957_v19 = vadd.f32 %v951_v17, %v871_v16  ;;  %v1913_v4 = vpop.f32.mrb[13].mxu1 }
0x1433   :  { %v954_v21 = vpop.f32.mrb[14].mxu1 }
0x1434   :  { %2081 = vtanh.f32 %v957_v19  ;;  %v1914_v23 = vpop.f32.mrb[15].mxu1  ;;  %v1722_v22 = vmul.f32 -1.442695, %v957_v19 }
0x1436   :  { %2083 = vpow2.f32 %v1722_v22 }
0x143e   :  { %v2082_v25 = vpop.eup %2081 }
0x143f   :  { %967 = vrot.lane.b32.xlu0 %v2082_v25, %s2160_s3 }
0x1440   :  { %v2084_v11 = vpop.eup %2083 }
0x1441   :  { %v961_v6 = vadd.f32 1.0, %v2084_v11 }
0x1443   :  { %2085 = vrcp.f32 %v961_v6 }
0x144d   :  { %v2086_v26 = vpop.eup %2085 }
0x144e   :  { %v965_v29 = vmul.f32 0.0, %v2086_v26 }
0x14b1   :  { %v968_v27 = vpop.permute.xlu0 %967 }
0x14b2   :  { %v970_v24 = vmul.f32 %v2086_v26, %v968_v27  ;;  %v879_v27 = vadd.f32 %v2435_v2, %v2445_v15 }
0x14b4   :  { %972 = vrot.lane.b32.xlu1 %v970_v24, %s2161_s30 }
0x1526   :  { %v973_v30 = vpop.permute.xlu1 %972 }
0x1527   :  { %v975_v32 = vadd.f32 %v973_v30, %v965_v29 }
0x1529   :  { %2087 = vtanh.f32 %v975_v32 }
0x152a   :  { %2089 = vtanh.f32 %v759_v8 }
0x152b   :  { %2091 = vpow2.f32 %v1712_v35 }
0x1533   :  { %v2088_v33 = vpop.eup %2087 }
0x1534   :  { %978 = vrot.lane.b32.xlu0 %v2088_v33, %s2160_s3  ;;  %v2090_v34 = vpop.eup %2089 }
0x1535   :  { %v2092_v36 = vpop.eup %2091 }
0x1536   :  { %v763_v37 = vadd.f32 1.0, %v2092_v36 }
0x1538   :  { %769 = vrot.lane.b32.xlu0 %v2090_v34, %s2160_s3  ;;  %2093 = vrcp.f32 %v763_v37 }
0x1542   :  { %v2094_v41 = vpop.eup %2093 }
0x1543   :  { %v767_v14 = vmul.f32 %v2094_v41, %v2381_v47 }
0x15a6   :  { %v979_v38 = vpop.permute.xlu0 %978 }
0x15a7   :  { %v981_v39 = vmul.f32 %v2086_v26, %v979_v38 }
0x15a9   :  { %v982_v40 = vpack.c.bf16 %v981_v39, %v981_v39 }
0x15aa   :  { %v770_v42 = vpop.permute.xlu0 %769 }
0x15ab   :  { %v772_v44 = vmul.f32 %v2094_v41, %v770_v42  ;;  %984 = vrot.lane.b32.xlu1 %v982_v40, %s2161_s30 }
0x15ad   :  { %774 = vrot.lane.b32.xlu0 %v772_v44, %s2161_s30 }
0x161d   :  { %v985_v45 = vpop.permute.xlu1 %984 }
0x161e   :  { %1920 = vmatmul.mubr.msk.bf16.vlgmr.msra.gmra.mrb[16].mxu1 %vm176_vm2, %v985_v45 }
0x161f   :  { %v775_v18 = vpop.permute.xlu0 %774  ;;  %1932 = vmatpush3.bf16.msra.mxu1 %v2409_v61  ;;  %1935 = vmatprep.mubr.msk.bf16.mxu1 %vm2158_vm1, %v2157_v1 }
0x1620   :  { %v777_v46 = vadd.f32 %v775_v18, %v767_v14  ;;  %1933 = vmatprep.subr.bf16.mxu1 %v2157_v1 }
0x1622   :  { %2095 = vtanh.f32 %v777_v46 }
0x1623   :  { %1934 = vmatpush3.bf16.msra.mxu1 %v2417_v62 }
0x1624   :  { %1947 = vmatprep.subr.bf16.mxu1 %v2157_v1 }
0x162c   :  { %v2096_v49 = vpop.eup %2095 }
0x162d   :  { %780 = vrot.lane.b32.xlu0 %v2096_v49, %s2160_s3  ;;  %v882_v49 = vadd.f32 %v2437_v3, %v2445_v15 }
0x1631   :  { %554 = vrot.lane.b32.xlu0 %v2352_v7, %s2161_s30 }
0x1635   :  { %708 = vrot.lane.b32.xlu0 %v2398_v53, %s2161_s30 }
0x169f   :  { %v781_v47 = vpop.permute.xlu0 %780 }
0x16a0   :  { %v783_v9 = vmul.f32 %v2094_v41, %v781_v47 }
0x16a3   :  { %v555_v50 = vpop.permute.xlu0 %554 }
0x16a4   :  { %557 = vst.msk [vmem:[#allocation2 + $0x20] sm:$0xff] %vm176_vm2, %v555_v50 }
0x16a7   :  { %v709_v51 = vpop.permute.xlu0 %708 }
0x16a8   :  { %711 = vst.msk [vmem:[#allocation2 + $0x30] sm:$0xff] %vm176_vm2, %v709_v51 }
0x16ab   :  { %v793_v17 = vld [vmem:[#allocation2 + $0x20] sm:$0xff] }
0x16f1   :  { %v1023_v28 = vpop.f32.mrb[16].mxu1 }
0x16f2   :  { %v1029_v52 = vadd.f32 %v1023_v28, %v874_v43  ;;  %v1921_v54 = vpop.f32.mrb[17].mxu1 }
0x16f3   :  { %v1026_v55 = vpop.f32.mrb[18].mxu1 }
0x16f4   :  { %2097 = vtanh.f32 %v1029_v52  ;;  %v1922_v56 = vpop.f32.mrb[19].mxu1  ;;  %v1724_v53 = vmul.f32 -1.442695, %v1029_v52 }
0x16f6   :  { %2099 = vpow2.f32 %v1724_v53 }
0x16fe   :  { %v2098_v7 = vpop.eup %2097 }
0x16ff   :  { %1039 = vrot.lane.b32.xlu1 %v2098_v7, %s2160_s3 }
0x1700   :  { %v2100_v57 = vpop.eup %2099 }
0x1701   :  { %v1033_v58 = vadd.f32 1.0, %v2100_v57 }
0x1703   :  { %2101 = vrcp.f32 %v1033_v58 }
0x170d   :  { %v2102_v63 = vpop.eup %2101 }
0x170e   :  { %v1037_v60 = vmul.f32 %v2102_v63, %v975_v32 }
0x1771   :  { %v1040_v48 = vpop.permute.xlu1 %1039 }
0x1772   :  { %v1042_v59 = vmul.f32 %v2102_v63, %v1040_v48 }
0x1774   :  { %1044 = vrot.lane.b32.xlu1 %v1042_v59, %s2161_s30 }
0x17e6   :  { %v1045_v0 = vpop.permute.xlu1 %1044 }
0x17e7   :  { %v1047_v20 = vadd.f32 %v1045_v0, %v1037_v60 }
0x17e9   :  { %2103 = vtanh.f32 %v1047_v20 }
0x17f3   :  { %v2104_v5 = vpop.eup %2103 }
0x17f4   :  { %1050 = vrot.lane.b32.xlu1 %v2104_v5, %s2160_s3 }
0x17f8   :  { %631 = vrot.lane.b32.xlu1 %v2368_v31, %s2161_s30  ;;  %v795_v31 = vld [vmem:[#allocation2 + $0x30] sm:$0xff] }
0x17fc   :  { %785 = vrot.lane.b32.xlu1 %v783_v9, %s2161_s30 }
0x1866   :  { %v1051_v8 = vpop.permute.xlu1 %1050 }
0x1867   :  { %v1053_v10 = vmul.f32 %v2102_v63, %v1051_v8 }
0x1869   :  { %v1054_v12 = vpack.c.bf16 %v1053_v10, %v1053_v10 }
0x186a   :  { %v632_v13 = vpop.permute.xlu1 %631 }
0x186b   :  { %634 = vst.msk [vmem:[#allocation2 + $0x28] sm:$0xff] %vm176_vm2, %v632_v13  ;;  %1056 = vrot.lane.b32.xlu0 %v1054_v12, %s2161_s30 }
0x186e   :  { %v786_v16 = vpop.permute.xlu1 %785 }
0x186f   :  { %788 = vst.msk [vmem:[#allocation2 + $0x38] sm:$0xff] %vm176_vm2, %v786_v16 }
0x1872   :  { %v794_v19 = vld [vmem:[#allocation2 + $0x28] sm:$0xff] }
0x1873   :  { %v799_v4 = vpack.c.bf16 %v794_v19, %v793_v17 }
0x1875   :  { %1903 = vmatprep.mubr.msk.bf16.mxu0 %vm176_vm2, %v799_v4 }
0x1876   :  { %v796_v21 = vld [vmem:[#allocation2 + $0x38] sm:$0xff] }
0x1877   :  { %v800_v23 = vpack.c.bf16 %v796_v21, %v795_v31 }
0x1879   :  { %1904 = vmatmul.mubr.msk.bf16.gmra.mrb[32].mxu0 %vm176_vm2, %v800_v23 }
0x187a   :  { %1927 = vmatprep.mubr.msk.bf16.mxu0 %vm2158_vm1, %v2157_v1 }
0x18dd   :  { %v1057_v25 = vpop.permute.xlu0 %1056 }
0x18de   :  { %1928 = vmatmul.mubr.msk.bf16.vlgmr.msra.gmra.mrb[36].mxu0 %vm176_vm2, %v1057_v25 }
0x18df   :  { %1940 = vmatpush3.bf16.msra.mxu0 %v2409_v61  ;;  %1943 = vmatprep.mubr.msk.bf16.mxu0 %vm2158_vm1, %v2157_v1 }
0x18e0   :  { %1941 = vmatprep.subr.bf16.mxu0 %v2157_v1 }
0x18e3   :  { %1942 = vmatpush3.bf16.msra.mxu0 %v2417_v62 }
0x18e4   :  { %1955 = vmatprep.subr.bf16.mxu0 %v2157_v1 }
0x194c   :  { %v2491_v22 = vpop.f32.mrb[32].mxu0 }
0x194d   :  { %v2493_v11 = vpop.f32.mrb[33].mxu0 }
0x194e   :  { %v2495_v6 = vpop.f32.mrb[34].mxu0  ;;  %v887_v5 = vadd.f32 %v2445_v15, %v2493_v11 }
0x194f   :  { %v2497_v26 = vpop.f32.mrb[35].mxu0 }
0x19b1   :  { %v1095_v24 = vpop.f32.mrb[36].mxu0 }
0x19b2   :  { %v1101_v29 = vadd.f32 %v1095_v24, %v879_v27  ;;  %v1929_v30 = vpop.f32.mrb[37].mxu0 }
0x19b3   :  { %v1098_v32 = vpop.f32.mrb[38].mxu0 }
0x19b4   :  { %2105 = vtanh.f32 %v1101_v29  ;;  %v1930_v33 = vpop.f32.mrb[39].mxu0  ;;  %v1726_v35 = vmul.f32 -1.442695, %v1101_v29 }
0x19b6   :  { %2107 = vpow2.f32 %v1726_v35 }
0x19be   :  { %v2106_v34 = vpop.eup %2105 }
0x19bf   :  { %1111 = vrot.lane.b32.xlu1 %v2106_v34, %s2160_s3  ;;  %v890_v34 = vadd.f32 %v2445_v15, %v2497_v26 }
0x19c0   :  { %v2108_v36 = vpop.eup %2107 }
0x19c1   :  { %v1105_v37 = vadd.f32 1.0, %v2108_v36 }
0x19c3   :  { %2109 = vrcp.f32 %v1105_v37 }
0x19cd   :  { %v2110_v38 = vpop.eup %2109 }
0x19ce   :  { %v1109_v2 = vmul.f32 %v2110_v38, %v1047_v20 }
0x1a31   :  { %v1112_v39 = vpop.permute.xlu1 %1111 }
0x1a32   :  { %v1114_v40 = vmul.f32 %v2110_v38, %v1112_v39 }
0x1a34   :  { %1116 = vrot.lane.b32.xlu0 %v1114_v40, %s2161_s30 }
0x1aa6   :  { %v1117_v41 = vpop.permute.xlu0 %1116 }
0x1aa7   :  { %v1119_v42 = vadd.f32 %v1117_v41, %v1109_v2 }
0x1aa9   :  { %2111 = vtanh.f32 %v1119_v42 }
0x1ab3   :  { %v2112_v44 = vpop.eup %2111 }
0x1ab4   :  { %1122 = vrot.lane.b32.xlu1 %v2112_v44, %s2160_s3 }
0x1b26   :  { %v1123_v45 = vpop.permute.xlu1 %1122 }
0x1b27   :  { %v1125_v14 = vmul.f32 %v2110_v38, %v1123_v45 }
0x1b29   :  { %v1126_v18 = vpack.c.bf16 %v1125_v14, %v1125_v14 }
0x1b2b   :  { %1128 = vrot.lane.b32.xlu0 %v1126_v18, %s2161_s30 }
0x1b9d   :  { %v1129_v46 = vpop.permute.xlu0 %1128 }
0x1b9e   :  { %1936 = vmatmul.mubr.msk.bf16.vlgmr.msra.gmra.mrb[20].mxu1 %vm176_vm2, %v1129_v46 }
0x1b9f   :  { %1948 = vmatpush3.bf16.msra.mxu1 %v2409_v61  ;;  %1951 = vmatprep.mubr.msk.bf16.mxu1 %vm2158_vm1, %v2157_v1 }
0x1ba0   :  { %1949 = vmatprep.subr.bf16.mxu1 %v2157_v1 }
0x1ba3   :  { %1950 = vmatpush3.bf16.msra.mxu1 %v2417_v62 }
0x1ba4   :  { %1963 = vmatprep.subr.bf16.mxu1 %v2157_v1 }
0x1c71   :  { %v1167_v47 = vpop.f32.mrb[20].mxu1 }
0x1c72   :  { %v1173_v50 = vadd.f32 %v1167_v47, %v882_v49  ;;  %v1937_v51 = vpop.f32.mrb[21].mxu1 }
0x1c73   :  { %v1170_v43 = vpop.f32.mrb[22].mxu1  ;;  %v895_v51 = vadd.f32 %v2491_v22, %v2445_v15 }
0x1c74   :  { %2113 = vtanh.f32 %v1173_v50  ;;  %v1938_v28 = vpop.f32.mrb[23].mxu1  ;;  %v1728_v54 = vmul.f32 -1.442695, %v1173_v50 }
0x1c76   :  { %2115 = vpow2.f32 %v1728_v54 }
0x1c7e   :  { %v2114_v52 = vpop.eup %2113 }
0x1c7f   :  { %1183 = vrot.lane.b32.xlu1 %v2114_v52, %s2160_s3 }
0x1c80   :  { %v2116_v55 = vpop.eup %2115 }
0x1c81   :  { %v1177_v56 = vadd.f32 1.0, %v2116_v55 }
0x1c83   :  { %2117 = vrcp.f32 %v1177_v56 }
0x1c8d   :  { %v2118_v7 = vpop.eup %2117 }
0x1c8e   :  { %v1181_v3 = vmul.f32 %v2118_v7, %v1119_v42 }
0x1cf1   :  { %v1184_v53 = vpop.permute.xlu1 %1183 }
0x1cf2   :  { %v1186_v57 = vmul.f32 %v2118_v7, %v1184_v53 }
0x1cf4   :  { %1188 = vrot.lane.b32.xlu0 %v1186_v57, %s2161_s30 }
0x1d66   :  { %v1189_v58 = vpop.permute.xlu0 %1188 }
0x1d67   :  { %v1191_v63 = vadd.f32 %v1189_v58, %v1181_v3 }
0x1d69   :  { %2119 = vtanh.f32 %v1191_v63 }
0x1d73   :  { %v2120_v48 = vpop.eup %2119 }
0x1d74   :  { %1194 = vrot.lane.b32.xlu1 %v2120_v48, %s2160_s3 }
0x1de6   :  { %v1195_v59 = vpop.permute.xlu1 %1194 }
0x1de7   :  { %v1197_v60 = vmul.f32 %v2118_v7, %v1195_v59 }
0x1de9   :  { %v1198_v0 = vpack.c.bf16 %v1197_v60, %v1197_v60 }
0x1deb   :  { %1200 = vrot.lane.b32.xlu0 %v1198_v0, %s2161_s30 }
0x1e5d   :  { %v1201_v20 = vpop.permute.xlu0 %1200 }
0x1e5e   :  { %1944 = vmatmul.mubr.msk.bf16.vlgmr.msra.gmra.mrb[40].mxu0 %vm176_vm2, %v1201_v20 }
0x1e5f   :  { %1956 = vmatpush3.bf16.msra.mxu0 %v2409_v61  ;;  %1959 = vmatprep.mubr.msk.bf16.mxu0 %vm2158_vm1, %v2157_v1 }
0x1e60   :  { %1957 = vmatprep.subr.bf16.mxu0 %v2157_v1 }
0x1e63   :  { %1958 = vmatpush3.bf16.msra.mxu0 %v2417_v62 }
0x1e64   :  { %1971 = vmatprep.subr.bf16.mxu0 %v2157_v1 }
0x1f31   :  { %v1239_v9 = vpop.f32.mrb[40].mxu0 }
0x1f32   :  { %v1245_v8 = vadd.f32 %v1239_v9, %v887_v5  ;;  %v1945_v10 = vpop.f32.mrb[41].mxu0 }
0x1f33   :  { %v1242_v12 = vpop.f32.mrb[42].mxu0 }
0x1f34   :  { %2121 = vtanh.f32 %v1245_v8  ;;  %v1946_v13 = vpop.f32.mrb[43].mxu0  ;;  %v1730_v17 = vmul.f32 -1.442695, %v1245_v8  ;;  %v898_v8 = vadd.f32 %v2495_v6, %v2445_v15 }
0x1f36   :  { %2123 = vpow2.f32 %v1730_v17 }
0x1f3e   :  { %v2122_v16 = vpop.eup %2121 }
0x1f3f   :  { %1255 = vrot.lane.b32.xlu1 %v2122_v16, %s2160_s3 }
0x1f40   :  { %v2124_v19 = vpop.eup %2123 }
0x1f41   :  { %v1249_v4 = vadd.f32 1.0, %v2124_v19 }
0x1f43   :  { %2125 = vrcp.f32 %v1249_v4 }
0x1f4d   :  { %v2126_v31 = vpop.eup %2125 }
0x1f4e   :  { %v1253_v25 = vmul.f32 %v2126_v31, %v1191_v63 }
0x1fb1   :  { %v1256_v21 = vpop.permute.xlu1 %1255 }
0x1fb2   :  { %v1258_v23 = vmul.f32 %v2126_v31, %v1256_v21 }
0x1fb4   :  { %1260 = vrot.lane.b32.xlu0 %v1258_v23, %s2161_s30 }
0x2026   :  { %v1261_v11 = vpop.permute.xlu0 %1260 }
0x2027   :  { %v1263_v27 = vadd.f32 %v1261_v11, %v1253_v25 }
0x2029   :  { %2127 = vtanh.f32 %v1263_v27 }
0x2033   :  { %v2128_v24 = vpop.eup %2127 }
0x2034   :  { %1266 = vrot.lane.b32.xlu1 %v2128_v24, %s2160_s3  ;;  %v2015_v24 = vld [vmem:[%s2620_s7] sm:$0xff]  }
0x20a6   :  { %v1267_v29 = vpop.permute.xlu1 %1266 }
0x20a7   :  { %v1269_v30 = vmul.f32 %v2126_v31, %v1267_v29  ;;  %v2016_v29 = vld [vmem:[%s2620_s7 + $0x8] sm:$0xff]  }
0x20a9   :  { %v1270_v32 = vpack.c.bf16 %v1269_v30, %v1269_v30 }
0x20ab   :  { %1272 = vrot.lane.b32.xlu0 %v1270_v32, %s2161_s30  ;;  %v2017_v32 = vld [vmem:[%s2621_s9] sm:$0xff]  }
0x211d   :  { %v1273_v33 = vpop.permute.xlu0 %1272 }
0x211e   :  { %1952 = vmatmul.mubr.msk.bf16.vlgmr.msra.gmra.mrb[24].mxu1 %vm176_vm2, %v1273_v33  ;;  %v2018_v33 = vld [vmem:[%s2621_s9 + $0x8] sm:$0xff]  }
0x211f   :  { %1964 = vmatpush3.bf16.msra.mxu1 %v2409_v61  ;;  %1967 = vmatprep.mubr.msk.bf16.mxu1 %vm2158_vm1, %v2157_v1 }
0x2120   :  { %1965 = vmatprep.subr.bf16.mxu1 %v2157_v1 }
0x2123   :  { %1966 = vmatpush3.bf16.msra.mxu1 %v2417_v62 }
0x2124   :  { %1979 = vmatprep.subr.bf16.mxu1 %v2157_v1 }
0x21f1   :  { %v1311_v35 = vpop.f32.mrb[24].mxu1 }
0x21f2   :  { %v1317_v36 = vadd.f32 %v1311_v35, %v890_v34  ;;  %v1953_v37 = vpop.f32.mrb[25].mxu1  ;;  %v2019_v34 = vld [vmem:[%s2621_s9 + $0x10] sm:$0xff]  }
0x21f3   :  { %v1314_v38 = vpop.f32.mrb[26].mxu1 }
0x21f4   :  { %2129 = vtanh.f32 %v1317_v36  ;;  %v1954_v39 = vpop.f32.mrb[27].mxu1  ;;  %v1732_v61 = vmul.f32 -1.442695, %v1317_v36  ;;  %v2020_v38 = vld [vmem:[%s2621_s9 + $0x18] sm:$0xff]  }
0x21f5   :  { %v2021_v39 = vld [vmem:[%s2621_s9 + $0x20] sm:$0xff]  }
0x21f6   :  { %2131 = vpow2.f32 %v1732_v61 }
0x21fe   :  { %v2130_v40 = vpop.eup %2129 }
0x21ff   :  { %1327 = vrot.lane.b32.xlu1 %v2130_v40, %s2160_s3  ;;  %v2022_v40 = vld [vmem:[%s2621_s9 + $0x28] sm:$0xff]  }
0x2200   :  { %v2132_v2 = vpop.eup %2131 }
0x2201   :  { %v1321_v41 = vadd.f32 1.0, %v2132_v2  ;;  %v2023_v2 = vld [vmem:[%s2621_s9 + $0x30] sm:$0xff]  }
0x2203   :  { %2133 = vrcp.f32 %v1321_v41  ;;  %v2024_v41 = vld [vmem:[%s2621_s9 + $0x38] sm:$0xff]  }
0x220d   :  { %v2134_v62 = vpop.eup %2133 }
0x220e   :  { %v1325_v26 = vmul.f32 %v2134_v62, %v1263_v27 }
0x2271   :  { %v1328_v42 = vpop.permute.xlu1 %1327 }
0x2272   :  { %v1330_v44 = vmul.f32 %v2134_v62, %v1328_v42 }
0x2274   :  { %1332 = vrot.lane.b32.xlu0 %v1330_v44, %s2161_s30 }
0x22e6   :  { %v1333_v45 = vpop.permute.xlu0 %1332 }
0x22e7   :  { %v1335_v14 = vadd.f32 %v1333_v45, %v1325_v26 }
0x22e9   :  { %2135 = vtanh.f32 %v1335_v14 }
0x22f3   :  { %v2136_v18 = vpop.eup %2135 }
0x22f4   :  { %1338 = vrot.lane.b32.xlu1 %v2136_v18, %s2160_s3 }
0x2366   :  { %v1339_v46 = vpop.permute.xlu1 %1338 }
0x2367   :  { %v1341_v49 = vmul.f32 %v2134_v62, %v1339_v46  ;;  %v1737_v62 = vld [vmem:[%s2622_s8] ss:$0 sm:$0xff] }
0x2369   :  { %v1342_v47 = vpack.c.bf16 %v1341_v49, %v1341_v49 }
0x236b   :  { %1344 = vrot.lane.b32.xlu0 %v1342_v47, %s2161_s30 }
0x23dd   :  { %v1345_v50 = vpop.permute.xlu0 %1344 }
0x23de   :  { %1960 = vmatmul.mubr.msk.bf16.vlgmr.msra.gmra.mrb[44].mxu0 %vm176_vm2, %v1345_v50 }
0x23df   :  { %1975 = vmatprep.mubr.msk.bf16.mxu0 %vm2158_vm1, %v2157_v1  ;;  %1972 = vmatpush3.bf16.msra.mxu0 %v2015_v24 }
0x23e0   :  { %1973 = vmatprep.subr.bf16.mxu0 %v2157_v1 }
0x23e3   :  { %1974 = vmatpush3.bf16.msra.mxu0 %v2016_v29 }
0x24b1   :  { %v1383_v43 = vpop.f32.mrb[44].mxu0 }
0x24b2   :  { %v1389_v28 = vadd.f32 %v1383_v43, %v895_v51  ;;  %v1961_v52 = vpop.f32.mrb[45].mxu0 }
0x24b3   :  { %v1386_v54 = vpop.f32.mrb[46].mxu0 }
0x24b4   :  { %2137 = vtanh.f32 %v1389_v28  ;;  %v1962_v55 = vpop.f32.mrb[47].mxu0  ;;  %v1734_v7 = vmul.f32 -1.442695, %v1389_v28 }
0x24b6   :  { %2139 = vpow2.f32 %v1734_v7 }
0x24be   :  { %v2138_v56 = vpop.eup %2137 }
0x24bf   :  { %1399 = vrot.lane.b32.xlu1 %v2138_v56, %s2160_s3 }
0x24c0   :  { %v2140_v53 = vpop.eup %2139 }
0x24c1   :  { %v1393_v57 = vadd.f32 1.0, %v2140_v53 }
0x24c3   :  { %2141 = vrcp.f32 %v1393_v57 }
0x24cd   :  { %v2142_v3 = vpop.eup %2141 }
0x24ce   :  { %v1397_v22 = vmul.f32 %v2142_v3, %v1335_v14 }
0x2531   :  { %v1400_v58 = vpop.permute.xlu1 %1399 }
0x2532   :  { %v1402_v63 = vmul.f32 %v2142_v3, %v1400_v58 }
0x2534   :  { %1404 = vrot.lane.b32.xlu0 %v1402_v63, %s2161_s30 }
0x25a6   :  { %v1405_v48 = vpop.permute.xlu0 %1404 }
0x25a7   :  { %v1407_v59 = vadd.f32 %v1405_v48, %v1397_v22 }
0x25a9   :  { %2143 = vtanh.f32 %v1407_v59 }
0x25b3   :  { %v2144_v60 = vpop.eup %2143 }
0x25b4   :  { %1410 = vrot.lane.b32.xlu1 %v2144_v60, %s2160_s3 }
0x2626   :  { %v1411_v0 = vpop.permute.xlu1 %1410 }
0x2627   :  { %v1413_v20 = vmul.f32 %v2142_v3, %v1411_v0 }
0x2629   :  { %v1414_v5 = vpack.c.bf16 %v1413_v20, %v1413_v20 }
0x262b   :  { %1416 = vrot.lane.b32.xlu0 %v1414_v5, %s2161_s30 }
0x269d   :  { %v1417_v9 = vpop.permute.xlu0 %1416 }
0x269e   :  { %1968 = vmatmul.mubr.msk.bf16.vlgmr.msra.gmra.mrb[28].mxu1 %vm176_vm2, %v1417_v9 }
0x269f   :  { %1995 = vmatprep.mubr.msk.bf16.mxu1 %vm2158_vm1, %v2157_v1  ;;  %1980 = vmatpush3.bf16.msra.mxu1 %v2017_v32 }
0x26a0   :  { %1981 = vmatprep.subr.bf16.mxu1 %v2157_v1 }
0x26a3   :  { %1982 = vmatpush3.bf16.msra.mxu1 %v2018_v33 }
0x26a4   :  { %1983 = vmatprep.subr.bf16.mxu1 %v2157_v1 }
0x26a7   :  { %1984 = vmatpush3.bf16.msra.mxu1 %v2019_v34 }
0x26a8   :  { %1985 = vmatprep.subr.bf16.mxu1 %v2157_v1 }
0x26ab   :  { %1986 = vmatpush3.bf16.msra.mxu1 %v2020_v38 }
0x26ac   :  { %1987 = vmatprep.subr.bf16.mxu1 %v2157_v1 }
0x26af   :  { %1988 = vmatpush3.bf16.msra.mxu1 %v2021_v39 }
0x26b0   :  { %1989 = vmatprep.subr.bf16.mxu1 %v2157_v1 }
0x26b3   :  { %1990 = vmatpush3.bf16.msra.mxu1 %v2022_v40 }
0x26b4   :  { %1991 = vmatprep.subr.bf16.mxu1 %v2157_v1 }
0x26b7   :  { %1992 = vmatpush3.bf16.msra.mxu1 %v2023_v2 }
0x26b8   :  { %1993 = vmatprep.subr.bf16.mxu1 %v2157_v1  ;;  %v1741_v1 = vld [vmem:[%s2623_s10] ss:$0 sm:$0xff] }
0x26bb   :  { %1994 = vmatpush3.bf16.msra.mxu1 %v2024_v41 }
0x2771   :  { %v1455_v10 = vpop.f32.mrb[28].mxu1 }
0x2772   :  { %v1461_v12 = vadd.f32 %v1455_v10, %v898_v8  ;;  %v1969_v13 = vpop.f32.mrb[29].mxu1 }
0x2773   :  { %v1458_v16 = vpop.f32.mrb[30].mxu1 }
0x2774   :  { %2145 = vtanh.f32 %v1461_v12  ;;  %v1970_v17 = vpop.f32.mrb[31].mxu1  ;;  %v1736_v4 = vmul.f32 -1.442695, %v1461_v12 }
0x2776   :  { %2147 = vpow2.f32 %v1736_v4 }
0x277e   :  { %v2146_v19 = vpop.eup %2145 }
0x277f   :  { %1471 = vrot.lane.b32.xlu1 %v2146_v19, %s2160_s3 }
0x2780   :  { %v2148_v31 = vpop.eup %2147 }
0x2781   :  { %v1465_v21 = vadd.f32 1.0, %v2148_v31 }
0x2783   :  { %2149 = vrcp.f32 %v1465_v21 }
0x278d   :  { %v2150_v23 = vpop.eup %2149 }
0x278e   :  { %v1469_v15 = vmul.f32 %v2150_v23, %v1407_v59 }
0x27f1   :  { %v1472_v25 = vpop.permute.xlu1 %1471 }
0x27f2   :  { %v1474_v11 = vmul.f32 %v2150_v23, %v1472_v25 }
0x27f4   :  { %1476 = vrot.lane.b32.xlu0 %v1474_v11, %s2161_s30 }
0x2866   :  { %v1477_v6 = vpop.permute.xlu0 %1476 }
0x2867   :  { %v1479_v27 = vadd.f32 %v1477_v6, %v1469_v15 }
0x2869   :  { %2151 = vtanh.f32 %v1479_v27 }
0x2873   :  { %v2152_v30 = vpop.eup %2151 }
0x2874   :  { %1482 = vrot.lane.b32.xlu1 %v2152_v30, %s2160_s3 }
0x28e6   :  { %v1483_v35 = vpop.permute.xlu1 %1482 }
0x28e7   :  { %v1485_v36 = vmul.f32 %v2150_v23, %v1483_v35 }
0x28e9   :  { %v1486_v37 = vpack.c.bf16 %v1485_v36, %v1485_v36 }
0x28eb   :  { %1499 = vrot.lane.b32.xlu0 %v1486_v37, %s2161_s30 }
0x295d   :  { %v1500_v61 = vpop.permute.xlu0 %1499 }
0x295e   :  { %1976 = vmatmul.mubr.msk.bf16.vlgmr.msra.gmra.mrb[48].mxu0 %vm176_vm2, %v1500_v61 }
0x2a31   :  { %v1550_v42 = vpop.f32.mrb[48].mxu0 }
0x2a32   :  { %v1551_v44 = vadd.f32 %v1737_v62, %v1550_v42  ;;  %v1977_v26 = vpop.f32.mrb[49].mxu0 }
0x2a33   :  { %v1553_v45 = vpop.f32.mrb[50].mxu0 }
0x2a34   :  { %v1556_v14 = vmax.f32 %v1551_v44, 0.0  ;;  %v1978_v18 = vpop.f32.mrb[51].mxu0 }
0x2a36   :  { %v1557_v46 = vpack.c.bf16 %v1556_v14, %v1556_v14 }
0x2a38   :  { %1996 = vmatmul.mubr.bf16.vlgmr.msra.gmra.mrb[32].mxu1 %v1557_v46 }
0x2b0b   :  { %v1663_v49 = vpop.f32.mrb[32].mxu1 }
0x2b0c   :  { %v1664_v47 = vadd.f32 %v1741_v1, %v1663_v49  ;;  %v1997_v50 = vpop.f32.mrb[33].mxu1 }
0x2b0d   :  { %v1666_v51 = vpop.f32.mrb[34].mxu1 }
0x2b0e   :  { %v1998_v43 = vpop.f32.mrb[35].mxu1  ;;  %v1670_v28 = vsel %vm1669_vm3, %v1664_v47, -inf }
0x2b0f   :  { %1671 = vmax.xlane.f32.xlu1 %v1670_v28 }
0x2b9c   :  { %v1672_v52 = vpop.xlane.xlu1 %1671 }
0x2b9d   :  { %v1673_v54 = vsub.f32 %v1664_v47, %v1672_v52 }
0x2b9f   :  { %v1674_v55 = vmul.f32 1.442695, %v1673_v54 }
0x2ba1   :  { %2153 = vpow2.f32 %v1674_v55 }
0x2bab   :  { %v2154_v56 = vpop.eup %2153 }
0x2bac   :  { %v1676_v7 = vsel %vm1669_vm3, %v2154_v56, 0.0 }
0x2bad   :  { %1677 = vadd.xlane.f32.xlu0 %v1676_v7 }
0x2c3a   :  { %v1678_v53 = vpop.xlane.xlu0 %1677 }
0x2c3b   :  { %2155 = vrcp.f32 %v1678_v53 }
0x2c45   :  { %v2156_v57 = vpop.eup %2155 }
0x2c46   :  { %v1680_v3 = vmul.f32 %v2156_v57, %v2154_v56 }
0x2c48   :  { %1681 = vst.msk [vmem:[%s2624_s11] sm:$0xff] %vm1669_vm3, %v1680_v3 }

</bundles_post_ra>
